<compile_context>
chip_gen: v5e
topology: v5e:2x2
jax: 0.10.0
libtpu: 0.0.40
codegen_flags: <defaults>
</compile_context>

<pallas_src>
import functools

import numpy as np
import jax
import jax.numpy as jnp
from jax.experimental import pallas as pl
from jax.experimental.pallas import tpu as pltpu

# MXU operand dtype. f32 keeps 1e-4 parity with the PyTorch reference; flip to
# jnp.bfloat16 on v6e/v7x for native MXU rate + half the operand VMEM (loosen
# the test tolerance, or keep only the heads conv in f32).
_MATMUL_DTYPE = jnp.float32


def reg_kernel(masks_ref, x_ref, w1_ref, w2_ref, wh_ref, out_ref, *, W):
    """Fused REG forward on one block of B images.

    masks_ref: (9, S)    per-tap in-image validity masks (0/1 f32), S = B*S_pad
    x_ref:     (C, S)    activations, per-image spatial flattened on lanes
    w1_ref/w2_ref: (9, C, C)  conv1/conv2 weights, tap-major (t = ky*3 + kx)
    wh_ref:        (9, 5, C)  fused convCoord(4 rows) + convScore(1 row)
    out_ref:   (5, S)    rows 0..3 = coord, row 4 = sigmoid(score)
    """
    S = x_ref.shape[1]

    # Hoisted tap offsets and (1, S) masks, shared by all three convolutions.
    offs = [oy * W + ox for oy in (-1, 0, 1) for ox in (-1, 0, 1)]
    masks = [masks_ref[pl.ds(t, 1), :] for t in range(9)]

    def conv3x3(a, w_ref):
        # Per-tap accumulation: no (9C, S) im2col materialization. XLU roll +
        # VPU mask multiply + one small MXU dot per tap, accumulated in f32.
        acc = None
        for t, off in enumerate(offs):
            shifted = a if off == 0 else pltpu.roll(a, (-off) % S, 1)
            tap = (shifted * masks[t]).astype(_MATMUL_DTYPE)
            w_t = w_ref[t].astype(_MATMUL_DTYPE)
            contrib = jnp.dot(w_t, tap, preferred_element_type=jnp.float32)
            acc = contrib if acc is None else acc + contrib
        return acc

    x = x_ref[...].astype(jnp.float32)
    f1 = jnp.maximum(conv3x3(x, w1_ref), 0.0)
    f2 = jnp.maximum(conv3x3(f1, w2_ref), 0.0)
    heads = conv3x3(f2, wh_ref)                          # (5, S)

    # Single lane-dense store; sigmoid only on the score row (EUP slot is free,
    # the row select is a cheap VPU where()).
    ridx = jax.lax.broadcasted_iota(jnp.int32, heads.shape, 0)
    out = jnp.where(ridx == 4, jax.nn.sigmoid(heads), heads)
    out_ref[...] = out.astype(out_ref.dtype)


def _vmem_estimate(C, S):
    """Conservative f32 live-set estimate (bytes) for one block of S lanes."""
    Cp = ((C + 7) // 8) * 8
    # x/shifted/acc/f slabs (+slack), heads, resident masks (sublane-padded,
    # double-buffered), input/output pipeline double-buffers; + 1 MiB fixed.
    rows = 5 * Cp + 8 + 2 * 16 + 2 * Cp + 2 * 8
    return 4 * S * rows + (1 << 20)


def _pick_images_per_step(N, S_pad, C, vmem_budget=40 << 20):
    """Images per grid step: stay under the v7x-safe VMEM budget and keep >=4
    (else >=2) grid steps so the pipeline overlaps and the batch axis can
    shard across v7x's two TensorCores."""
    cands = [b for b in range(1, N + 1)
             if N % b == 0 and _vmem_estimate(C, b * S_pad) <= vmem_budget]
    if not cands:
        return 1
    for min_steps in (4, 2, 1):
        tier = [b for b in cands if N // b >= min_steps]
        if tier:
            return max(tier)
    return 1


def _tap_masks(B, H, W, S_pad):
    """(9, B*S_pad) 0/1 masks: tap t of position p is 1 iff the tapped pixel is
    inside the same image (implements padding=1 zero-padding under roll-wrap)."""
    S_img = H * W
    i = np.arange(S_pad)
    row, col = i // W, i % W
    in_img = i < S_img
    ms = []
    for oy in (-1, 0, 1):
        for ox in (-1, 0, 1):
            ms.append(in_img & (row + oy >= 0) & (row + oy < H)
                      & (col + ox >= 0) & (col + ox < W))
    m = np.stack(ms, 0).astype(np.float32)               # (9, S_pad)
    return jnp.asarray(np.tile(m, (1, B)))                # (9, B*S_pad)


def reg_forward(feat_nchw, w1, w2, wc, ws):
    """feat_nchw: (N, C, H, W); weights in PyTorch OIHW. Returns (coord, score) NCHW."""
    N, C, H, W = feat_nchw.shape
    S_img = H * W
    S_pad = ((S_img + 127) // 128) * 128                  # lane-dense blocks/stores

    # Activations: NCHW -> (C, N*S_pad), per-image spatial flattened on lanes.
    x3 = jnp.transpose(feat_nchw, (1, 0, 2, 3)).reshape(C, N, S_img)
    if S_pad != S_img:
        x3 = jnp.pad(x3, ((0, 0), (0, 0), (0, S_pad - S_img)))
    x_flat = x3.reshape(C, N * S_pad)

    def taps(w):  # OIHW -> (9, Cout, Cin), tap index t = ky*3 + kx
        return jnp.transpose(w, (2, 3, 0, 1)).reshape(9, w.shape[0], w.shape[1])

    w1t, w2t = taps(w1), taps(w2)
    wht = taps(jnp.concatenate([wc, ws], axis=0))         # fused heads (9, 5, C)

    B = _pick_images_per_step(N, S_pad, C)
    S_blk = B * S_pad
    grid = (N // B,)
    masks = _tap_masks(B, H, W, S_pad)

    vmem_limit = int(min(max(2 * _vmem_estimate(C, S_blk), 32 << 20), 48 << 20))

    const2 = lambda b: (0, 0)
    const3 = lambda b: (0, 0, 0)

    out_flat = pl.pallas_call(
        functools.partial(reg_kernel, W=W),
        out_shape=jax.ShapeDtypeStruct((5, N * S_pad), feat_nchw.dtype),
        grid_spec=pltpu.PrefetchScalarGridSpec(
            num_scalar_prefetch=0,
            grid=grid,
            in_specs=[
                pl.BlockSpec((9, S_blk), const2),          # tap masks (resident)
                pl.BlockSpec((C, S_blk), lambda b: (0, b)),  # activations
                pl.BlockSpec((9, C, C), const3),           # conv1
                pl.BlockSpec((9, C, C), const3),           # conv2
                pl.BlockSpec((9, 5, C), const3),           # fused heads
            ],
            out_specs=pl.BlockSpec((5, S_blk), lambda b: (0, b))),
        compiler_params=pltpu.CompilerParams(
            dimension_semantics=("parallel",),
            vmem_limit_bytes=vmem_limit),
    )(masks, x_flat, w1t, w2t, wht)

    # (5, N*S_pad) -> drop spatial pad -> NCHW via cheap XLA reshape/transpose.
    out = out_flat.reshape(5, N, S_pad)[:, :, :S_img].reshape(5, N, H, W)
    coord = jnp.transpose(out[0:4], (1, 0, 2, 3))
    score = jnp.transpose(out[4:5], (1, 0, 2, 3))
    return coord, score


def _conv_ref(x, w):
    """Pure-JAX reference: nn.Conv2d(k=3, pad=1, bias=False), NCHW / OIHW."""
    return jax.lax.conv_general_dilated(
        x, w, window_strides=(1, 1), padding=((1, 1), (1, 1)),
        dimension_numbers=("NCHW", "OIHW", "NCHW"))


def reg_forward_ref(feat, w1, w2, wc, ws):
    f = jax.nn.relu(_conv_ref(feat, w1))
    f = jax.nn.relu(_conv_ref(f, w2))
    coord = _conv_ref(f, wc)
    score = jax.nn.sigmoid(_conv_ref(f, ws))
    return coord, score


if __name__ == "__main__":
    N, C, H, W = 2, 4, 16, 16

    key = jax.random.PRNGKey(0)
    kx, k1, k2, kc, ks = jax.random.split(key, 5)

    feat = jax.random.normal(kx, (N, C, H, W), dtype=jnp.float32)
    # Deterministic synthetic weights (same shapes as the nn.Conv2d params).
    w1 = 0.1 * jax.random.normal(k1, (C, C, 3, 3), dtype=jnp.float32)
    w2 = 0.1 * jax.random.normal(k2, (C, C, 3, 3), dtype=jnp.float32)
    wc = 0.1 * jax.random.normal(kc, (4, C, 3, 3), dtype=jnp.float32)
    ws = 0.1 * jax.random.normal(ks, (1, C, 3, 3), dtype=jnp.float32)

    coord, score = jax.block_until_ready(reg_forward(feat, w1, w2, wc, ws))

    coord_ref, score_ref = reg_forward_ref(feat, w1, w2, wc, ws)
    assert coord.shape == (N, 4, H, W) and score.shape == (N, 1, H, W)
    assert jnp.allclose(coord, coord_ref, atol=1e-4, rtol=1e-4)
    assert jnp.allclose(score, score_ref, atol=1e-4, rtol=1e-4)

    print("KERNEL_OK")
</pallas_src>

<mosaic_0001>
module attributes {stable_mosaic.version = 11 : i64} {
  func.func @reg_kernel(%arg0: i32, %arg1: memref<9x256xf32, #tpu.memory_space<vmem>>, %arg2: memref<4x256xf32, #tpu.memory_space<vmem>>, %arg3: memref<9x4x4xf32, #tpu.memory_space<vmem>>, %arg4: memref<9x4x4xf32, #tpu.memory_space<vmem>>, %arg5: memref<9x5x4xf32, #tpu.memory_space<vmem>>, %arg6: memref<5x256xf32, #tpu.memory_space<vmem>>) attributes {dimension_semantics = [#tpu.dimension_semantics<parallel>], iteration_bounds = array<i64: 2>, scalar_prefetch = 0 : i64, scratch_operands = 0 : i64, tpu.core_type = #tpu.core_type<tc>, window_params = [{pipeline_mode = #tpu.pipeline_mode<synchronous>, transform_indices = @transform_0, window_bounds = array<i64: 9, 256>}, {transform_indices = @transform_1, window_bounds = array<i64: 4, 256>}, {pipeline_mode = #tpu.pipeline_mode<synchronous>, transform_indices = @transform_2, window_bounds = array<i64: 9, 4, 4>}, {pipeline_mode = #tpu.pipeline_mode<synchronous>, transform_indices = @transform_3, window_bounds = array<i64: 9, 4, 4>}, {pipeline_mode = #tpu.pipeline_mode<synchronous>, transform_indices = @transform_4, window_bounds = array<i64: 9, 5, 4>}, {transform_indices = @transform_5, window_bounds = array<i64: 5, 256>}]} {
    %c0 = arith.constant 0 : index
    %c0_0 = arith.constant 0 : index
    %0 = vector.load %arg1[%c0, %c0_0] : memref<9x256xf32, #tpu.memory_space<vmem>>, vector<1x256xf32>
    %c1 = arith.constant 1 : index
    %c0_1 = arith.constant 0 : index
    %1 = vector.load %arg1[%c1, %c0_1] : memref<9x256xf32, #tpu.memory_space<vmem>>, vector<1x256xf32>
    %c2 = arith.constant 2 : index
    %c0_2 = arith.constant 0 : index
    %2 = vector.load %arg1[%c2, %c0_2] : memref<9x256xf32, #tpu.memory_space<vmem>>, vector<1x256xf32>
    %c3 = arith.constant 3 : index
    %c0_3 = arith.constant 0 : index
    %3 = vector.load %arg1[%c3, %c0_3] : memref<9x256xf32, #tpu.memory_space<vmem>>, vector<1x256xf32>
    %c4 = arith.constant 4 : index
    %c0_4 = arith.constant 0 : index
    %4 = vector.load %arg1[%c4, %c0_4] : memref<9x256xf32, #tpu.memory_space<vmem>>, vector<1x256xf32>
    %c5 = arith.constant 5 : index
    %c0_5 = arith.constant 0 : index
    %5 = vector.load %arg1[%c5, %c0_5] : memref<9x256xf32, #tpu.memory_space<vmem>>, vector<1x256xf32>
    %c6 = arith.constant 6 : index
    %c0_6 = arith.constant 0 : index
    %6 = vector.load %arg1[%c6, %c0_6] : memref<9x256xf32, #tpu.memory_space<vmem>>, vector<1x256xf32>
    %c7 = arith.constant 7 : index
    %c0_7 = arith.constant 0 : index
    %7 = vector.load %arg1[%c7, %c0_7] : memref<9x256xf32, #tpu.memory_space<vmem>>, vector<1x256xf32>
    %c8 = arith.constant 8 : index
    %c0_8 = arith.constant 0 : index
    %8 = vector.load %arg1[%c8, %c0_8] : memref<9x256xf32, #tpu.memory_space<vmem>>, vector<1x256xf32>
    %c0_9 = arith.constant 0 : index
    %c0_10 = arith.constant 0 : index
    %9 = vector.load %arg2[%c0_9, %c0_10] : memref<4x256xf32, #tpu.memory_space<vmem>>, vector<4x256xf32>
    %c17_i32 = arith.constant 17 : i32
    %10 = tpu.dynamic_rotate %9 by %c17_i32 dim 1 : vector<4x256xf32>, i32 -> vector<4x256xf32>
    %11 = vector.broadcast %0 : vector<1x256xf32> to vector<4x256xf32>
    %12 = arith.mulf %10, %11 : vector<4x256xf32>
    %c0_11 = arith.constant 0 : index
    %c0_12 = arith.constant 0 : index
    %c0_13 = arith.constant 0 : index
    %13 = vector.load %arg3[%c0_11, %c0_12, %c0_13] : memref<9x4x4xf32, #tpu.memory_space<vmem>>, vector<1x4x4xf32>
    %14 = vector.shape_cast %13 : vector<1x4x4xf32> to vector<4x4xf32>
    %cst = arith.constant dense<0.000000e+00> : vector<4x256xf32>
    %15 = tpu.matmul %14, %12, %cst {dimension_numbers = #tpu.dot_dimension_numbers<[1], [0], [0], [1], [0, 0, 1, 1], [], []>} : vector<4x4xf32>, vector<4x256xf32>, vector<4x256xf32> -> vector<4x256xf32>
    %c16_i32 = arith.constant 16 : i32
    %16 = tpu.dynamic_rotate %9 by %c16_i32 dim 1 : vector<4x256xf32>, i32 -> vector<4x256xf32>
    %17 = vector.broadcast %1 : vector<1x256xf32> to vector<4x256xf32>
    %18 = arith.mulf %16, %17 : vector<4x256xf32>
    %c1_14 = arith.constant 1 : index
    %c0_15 = arith.constant 0 : index
    %c0_16 = arith.constant 0 : index
    %19 = vector.load %arg3[%c1_14, %c0_15, %c0_16] : memref<9x4x4xf32, #tpu.memory_space<vmem>>, vector<1x4x4xf32>
    %20 = vector.shape_cast %19 : vector<1x4x4xf32> to vector<4x4xf32>
    %cst_17 = arith.constant dense<0.000000e+00> : vector<4x256xf32>
    %21 = tpu.matmul %20, %18, %cst_17 {dimension_numbers = #tpu.dot_dimension_numbers<[1], [0], [0], [1], [0, 0, 1, 1], [], []>} : vector<4x4xf32>, vector<4x256xf32>, vector<4x256xf32> -> vector<4x256xf32>
    %22 = arith.addf %15, %21 : vector<4x256xf32>
    %c15_i32 = arith.constant 15 : i32
    %23 = tpu.dynamic_rotate %9 by %c15_i32 dim 1 : vector<4x256xf32>, i32 -> vector<4x256xf32>
    %24 = vector.broadcast %2 : vector<1x256xf32> to vector<4x256xf32>
    %25 = arith.mulf %23, %24 : vector<4x256xf32>
    %c2_18 = arith.constant 2 : index
    %c0_19 = arith.constant 0 : index
    %c0_20 = arith.constant 0 : index
    %26 = vector.load %arg3[%c2_18, %c0_19, %c0_20] : memref<9x4x4xf32, #tpu.memory_space<vmem>>, vector<1x4x4xf32>
    %27 = vector.shape_cast %26 : vector<1x4x4xf32> to vector<4x4xf32>
    %cst_21 = arith.constant dense<0.000000e+00> : vector<4x256xf32>
    %28 = tpu.matmul %27, %25, %cst_21 {dimension_numbers = #tpu.dot_dimension_numbers<[1], [0], [0], [1], [0, 0, 1, 1], [], []>} : vector<4x4xf32>, vector<4x256xf32>, vector<4x256xf32> -> vector<4x256xf32>
    %29 = arith.addf %22, %28 : vector<4x256xf32>
    %c1_i32 = arith.constant 1 : i32
    %30 = tpu.dynamic_rotate %9 by %c1_i32 dim 1 : vector<4x256xf32>, i32 -> vector<4x256xf32>
    %31 = vector.broadcast %3 : vector<1x256xf32> to vector<4x256xf32>
    %32 = arith.mulf %30, %31 : vector<4x256xf32>
    %c3_22 = arith.constant 3 : index
    %c0_23 = arith.constant 0 : index
    %c0_24 = arith.constant 0 : index
    %33 = vector.load %arg3[%c3_22, %c0_23, %c0_24] : memref<9x4x4xf32, #tpu.memory_space<vmem>>, vector<1x4x4xf32>
    %34 = vector.shape_cast %33 : vector<1x4x4xf32> to vector<4x4xf32>
    %cst_25 = arith.constant dense<0.000000e+00> : vector<4x256xf32>
    %35 = tpu.matmul %34, %32, %cst_25 {dimension_numbers = #tpu.dot_dimension_numbers<[1], [0], [0], [1], [0, 0, 1, 1], [], []>} : vector<4x4xf32>, vector<4x256xf32>, vector<4x256xf32> -> vector<4x256xf32>
    %36 = arith.addf %29, %35 : vector<4x256xf32>
    %37 = vector.broadcast %4 : vector<1x256xf32> to vector<4x256xf32>
    %38 = arith.mulf %9, %37 : vector<4x256xf32>
    %c4_26 = arith.constant 4 : index
    %c0_27 = arith.constant 0 : index
    %c0_28 = arith.constant 0 : index
    %39 = vector.load %arg3[%c4_26, %c0_27, %c0_28] : memref<9x4x4xf32, #tpu.memory_space<vmem>>, vector<1x4x4xf32>
    %40 = vector.shape_cast %39 : vector<1x4x4xf32> to vector<4x4xf32>
    %cst_29 = arith.constant dense<0.000000e+00> : vector<4x256xf32>
    %41 = tpu.matmul %40, %38, %cst_29 {dimension_numbers = #tpu.dot_dimension_numbers<[1], [0], [0], [1], [0, 0, 1, 1], [], []>} : vector<4x4xf32>, vector<4x256xf32>, vector<4x256xf32> -> vector<4x256xf32>
    %42 = arith.addf %36, %41 : vector<4x256xf32>
    %c255_i32 = arith.constant 255 : i32
    %43 = tpu.dynamic_rotate %9 by %c255_i32 dim 1 : vector<4x256xf32>, i32 -> vector<4x256xf32>
    %44 = vector.broadcast %5 : vector<1x256xf32> to vector<4x256xf32>
    %45 = arith.mulf %43, %44 : vector<4x256xf32>
    %c5_30 = arith.constant 5 : index
    %c0_31 = arith.constant 0 : index
    %c0_32 = arith.constant 0 : index
    %46 = vector.load %arg3[%c5_30, %c0_31, %c0_32] : memref<9x4x4xf32, #tpu.memory_space<vmem>>, vector<1x4x4xf32>
    %47 = vector.shape_cast %46 : vector<1x4x4xf32> to vector<4x4xf32>
    %cst_33 = arith.constant dense<0.000000e+00> : vector<4x256xf32>
    %48 = tpu.matmul %47, %45, %cst_33 {dimension_numbers = #tpu.dot_dimension_numbers<[1], [0], [0], [1], [0, 0, 1, 1], [], []>} : vector<4x4xf32>, vector<4x256xf32>, vector<4x256xf32> -> vector<4x256xf32>
    %49 = arith.addf %42, %48 : vector<4x256xf32>
    %c241_i32 = arith.constant 241 : i32
    %50 = tpu.dynamic_rotate %9 by %c241_i32 dim 1 : vector<4x256xf32>, i32 -> vector<4x256xf32>
    %51 = vector.broadcast %6 : vector<1x256xf32> to vector<4x256xf32>
    %52 = arith.mulf %50, %51 : vector<4x256xf32>
    %c6_34 = arith.constant 6 : index
    %c0_35 = arith.constant 0 : index
    %c0_36 = arith.constant 0 : index
    %53 = vector.load %arg3[%c6_34, %c0_35, %c0_36] : memref<9x4x4xf32, #tpu.memory_space<vmem>>, vector<1x4x4xf32>
    %54 = vector.shape_cast %53 : vector<1x4x4xf32> to vector<4x4xf32>
    %cst_37 = arith.constant dense<0.000000e+00> : vector<4x256xf32>
    %55 = tpu.matmul %54, %52, %cst_37 {dimension_numbers = #tpu.dot_dimension_numbers<[1], [0], [0], [1], [0, 0, 1, 1], [], []>} : vector<4x4xf32>, vector<4x256xf32>, vector<4x256xf32> -> vector<4x256xf32>
    %56 = arith.addf %49, %55 : vector<4x256xf32>
    %c240_i32 = arith.constant 240 : i32
    %57 = tpu.dynamic_rotate %9 by %c240_i32 dim 1 : vector<4x256xf32>, i32 -> vector<4x256xf32>
    %58 = vector.broadcast %7 : vector<1x256xf32> to vector<4x256xf32>
    %59 = arith.mulf %57, %58 : vector<4x256xf32>
    %c7_38 = arith.constant 7 : index
    %c0_39 = arith.constant 0 : index
    %c0_40 = arith.constant 0 : index
    %60 = vector.load %arg3[%c7_38, %c0_39, %c0_40] : memref<9x4x4xf32, #tpu.memory_space<vmem>>, vector<1x4x4xf32>
    %61 = vector.shape_cast %60 : vector<1x4x4xf32> to vector<4x4xf32>
    %cst_41 = arith.constant dense<0.000000e+00> : vector<4x256xf32>
    %62 = tpu.matmul %61, %59, %cst_41 {dimension_numbers = #tpu.dot_dimension_numbers<[1], [0], [0], [1], [0, 0, 1, 1], [], []>} : vector<4x4xf32>, vector<4x256xf32>, vector<4x256xf32> -> vector<4x256xf32>
    %63 = arith.addf %56, %62 : vector<4x256xf32>
    %c239_i32 = arith.constant 239 : i32
    %64 = tpu.dynamic_rotate %9 by %c239_i32 dim 1 : vector<4x256xf32>, i32 -> vector<4x256xf32>
    %65 = vector.broadcast %8 : vector<1x256xf32> to vector<4x256xf32>
    %66 = arith.mulf %64, %65 : vector<4x256xf32>
    %c8_42 = arith.constant 8 : index
    %c0_43 = arith.constant 0 : index
    %c0_44 = arith.constant 0 : index
    %67 = vector.load %arg3[%c8_42, %c0_43, %c0_44] : memref<9x4x4xf32, #tpu.memory_space<vmem>>, vector<1x4x4xf32>
    %68 = vector.shape_cast %67 : vector<1x4x4xf32> to vector<4x4xf32>
    %cst_45 = arith.constant dense<0.000000e+00> : vector<4x256xf32>
    %69 = tpu.matmul %68, %66, %cst_45 {dimension_numbers = #tpu.dot_dimension_numbers<[1], [0], [0], [1], [0, 0, 1, 1], [], []>} : vector<4x4xf32>, vector<4x256xf32>, vector<4x256xf32> -> vector<4x256xf32>
    %70 = arith.addf %63, %69 : vector<4x256xf32>
    %cst_46 = arith.constant 0.000000e+00 : f32
    %71 = vector.broadcast %cst_46 : f32 to vector<4x256xf32>
    %72 = arith.maximumf %70, %71 : vector<4x256xf32>
    %c17_i32_47 = arith.constant 17 : i32
    %73 = tpu.dynamic_rotate %72 by %c17_i32_47 dim 1 : vector<4x256xf32>, i32 -> vector<4x256xf32>
    %74 = vector.broadcast %0 : vector<1x256xf32> to vector<4x256xf32>
    %75 = arith.mulf %73, %74 : vector<4x256xf32>
    %c0_48 = arith.constant 0 : index
    %c0_49 = arith.constant 0 : index
    %c0_50 = arith.constant 0 : index
    %76 = vector.load %arg4[%c0_48, %c0_49, %c0_50] : memref<9x4x4xf32, #tpu.memory_space<vmem>>, vector<1x4x4xf32>
    %77 = vector.shape_cast %76 : vector<1x4x4xf32> to vector<4x4xf32>
    %cst_51 = arith.constant dense<0.000000e+00> : vector<4x256xf32>
    %78 = tpu.matmul %77, %75, %cst_51 {dimension_numbers = #tpu.dot_dimension_numbers<[1], [0], [0], [1], [0, 0, 1, 1], [], []>} : vector<4x4xf32>, vector<4x256xf32>, vector<4x256xf32> -> vector<4x256xf32>
    %c16_i32_52 = arith.constant 16 : i32
    %79 = tpu.dynamic_rotate %72 by %c16_i32_52 dim 1 : vector<4x256xf32>, i32 -> vector<4x256xf32>
    %80 = vector.broadcast %1 : vector<1x256xf32> to vector<4x256xf32>
    %81 = arith.mulf %79, %80 : vector<4x256xf32>
    %c1_53 = arith.constant 1 : index
    %c0_54 = arith.constant 0 : index
    %c0_55 = arith.constant 0 : index
    %82 = vector.load %arg4[%c1_53, %c0_54, %c0_55] : memref<9x4x4xf32, #tpu.memory_space<vmem>>, vector<1x4x4xf32>
    %83 = vector.shape_cast %82 : vector<1x4x4xf32> to vector<4x4xf32>
    %cst_56 = arith.constant dense<0.000000e+00> : vector<4x256xf32>
    %84 = tpu.matmul %83, %81, %cst_56 {dimension_numbers = #tpu.dot_dimension_numbers<[1], [0], [0], [1], [0, 0, 1, 1], [], []>} : vector<4x4xf32>, vector<4x256xf32>, vector<4x256xf32> -> vector<4x256xf32>
    %85 = arith.addf %78, %84 : vector<4x256xf32>
    %c15_i32_57 = arith.constant 15 : i32
    %86 = tpu.dynamic_rotate %72 by %c15_i32_57 dim 1 : vector<4x256xf32>, i32 -> vector<4x256xf32>
    %87 = vector.broadcast %2 : vector<1x256xf32> to vector<4x256xf32>
    %88 = arith.mulf %86, %87 : vector<4x256xf32>
    %c2_58 = arith.constant 2 : index
    %c0_59 = arith.constant 0 : index
    %c0_60 = arith.constant 0 : index
    %89 = vector.load %arg4[%c2_58, %c0_59, %c0_60] : memref<9x4x4xf32, #tpu.memory_space<vmem>>, vector<1x4x4xf32>
    %90 = vector.shape_cast %89 : vector<1x4x4xf32> to vector<4x4xf32>
    %cst_61 = arith.constant dense<0.000000e+00> : vector<4x256xf32>
    %91 = tpu.matmul %90, %88, %cst_61 {dimension_numbers = #tpu.dot_dimension_numbers<[1], [0], [0], [1], [0, 0, 1, 1], [], []>} : vector<4x4xf32>, vector<4x256xf32>, vector<4x256xf32> -> vector<4x256xf32>
    %92 = arith.addf %85, %91 : vector<4x256xf32>
    %c1_i32_62 = arith.constant 1 : i32
    %93 = tpu.dynamic_rotate %72 by %c1_i32_62 dim 1 : vector<4x256xf32>, i32 -> vector<4x256xf32>
    %94 = vector.broadcast %3 : vector<1x256xf32> to vector<4x256xf32>
    %95 = arith.mulf %93, %94 : vector<4x256xf32>
    %c3_63 = arith.constant 3 : index
    %c0_64 = arith.constant 0 : index
    %c0_65 = arith.constant 0 : index
    %96 = vector.load %arg4[%c3_63, %c0_64, %c0_65] : memref<9x4x4xf32, #tpu.memory_space<vmem>>, vector<1x4x4xf32>
    %97 = vector.shape_cast %96 : vector<1x4x4xf32> to vector<4x4xf32>
    %cst_66 = arith.constant dense<0.000000e+00> : vector<4x256xf32>
    %98 = tpu.matmul %97, %95, %cst_66 {dimension_numbers = #tpu.dot_dimension_numbers<[1], [0], [0], [1], [0, 0, 1, 1], [], []>} : vector<4x4xf32>, vector<4x256xf32>, vector<4x256xf32> -> vector<4x256xf32>
    %99 = arith.addf %92, %98 : vector<4x256xf32>
    %100 = vector.broadcast %4 : vector<1x256xf32> to vector<4x256xf32>
    %101 = arith.mulf %72, %100 : vector<4x256xf32>
    %c4_67 = arith.constant 4 : index
    %c0_68 = arith.constant 0 : index
    %c0_69 = arith.constant 0 : index
    %102 = vector.load %arg4[%c4_67, %c0_68, %c0_69] : memref<9x4x4xf32, #tpu.memory_space<vmem>>, vector<1x4x4xf32>
    %103 = vector.shape_cast %102 : vector<1x4x4xf32> to vector<4x4xf32>
    %cst_70 = arith.constant dense<0.000000e+00> : vector<4x256xf32>
    %104 = tpu.matmul %103, %101, %cst_70 {dimension_numbers = #tpu.dot_dimension_numbers<[1], [0], [0], [1], [0, 0, 1, 1], [], []>} : vector<4x4xf32>, vector<4x256xf32>, vector<4x256xf32> -> vector<4x256xf32>
    %105 = arith.addf %99, %104 : vector<4x256xf32>
    %c255_i32_71 = arith.constant 255 : i32
    %106 = tpu.dynamic_rotate %72 by %c255_i32_71 dim 1 : vector<4x256xf32>, i32 -> vector<4x256xf32>
    %107 = vector.broadcast %5 : vector<1x256xf32> to vector<4x256xf32>
    %108 = arith.mulf %106, %107 : vector<4x256xf32>
    %c5_72 = arith.constant 5 : index
    %c0_73 = arith.constant 0 : index
    %c0_74 = arith.constant 0 : index
    %109 = vector.load %arg4[%c5_72, %c0_73, %c0_74] : memref<9x4x4xf32, #tpu.memory_space<vmem>>, vector<1x4x4xf32>
    %110 = vector.shape_cast %109 : vector<1x4x4xf32> to vector<4x4xf32>
    %cst_75 = arith.constant dense<0.000000e+00> : vector<4x256xf32>
    %111 = tpu.matmul %110, %108, %cst_75 {dimension_numbers = #tpu.dot_dimension_numbers<[1], [0], [0], [1], [0, 0, 1, 1], [], []>} : vector<4x4xf32>, vector<4x256xf32>, vector<4x256xf32> -> vector<4x256xf32>
    %112 = arith.addf %105, %111 : vector<4x256xf32>
    %c241_i32_76 = arith.constant 241 : i32
    %113 = tpu.dynamic_rotate %72 by %c241_i32_76 dim 1 : vector<4x256xf32>, i32 -> vector<4x256xf32>
    %114 = vector.broadcast %6 : vector<1x256xf32> to vector<4x256xf32>
    %115 = arith.mulf %113, %114 : vector<4x256xf32>
    %c6_77 = arith.constant 6 : index
    %c0_78 = arith.constant 0 : index
    %c0_79 = arith.constant 0 : index
    %116 = vector.load %arg4[%c6_77, %c0_78, %c0_79] : memref<9x4x4xf32, #tpu.memory_space<vmem>>, vector<1x4x4xf32>
    %117 = vector.shape_cast %116 : vector<1x4x4xf32> to vector<4x4xf32>
    %cst_80 = arith.constant dense<0.000000e+00> : vector<4x256xf32>
    %118 = tpu.matmul %117, %115, %cst_80 {dimension_numbers = #tpu.dot_dimension_numbers<[1], [0], [0], [1], [0, 0, 1, 1], [], []>} : vector<4x4xf32>, vector<4x256xf32>, vector<4x256xf32> -> vector<4x256xf32>
    %119 = arith.addf %112, %118 : vector<4x256xf32>
    %c240_i32_81 = arith.constant 240 : i32
    %120 = tpu.dynamic_rotate %72 by %c240_i32_81 dim 1 : vector<4x256xf32>, i32 -> vector<4x256xf32>
    %121 = vector.broadcast %7 : vector<1x256xf32> to vector<4x256xf32>
    %122 = arith.mulf %120, %121 : vector<4x256xf32>
    %c7_82 = arith.constant 7 : index
    %c0_83 = arith.constant 0 : index
    %c0_84 = arith.constant 0 : index
    %123 = vector.load %arg4[%c7_82, %c0_83, %c0_84] : memref<9x4x4xf32, #tpu.memory_space<vmem>>, vector<1x4x4xf32>
    %124 = vector.shape_cast %123 : vector<1x4x4xf32> to vector<4x4xf32>
    %cst_85 = arith.constant dense<0.000000e+00> : vector<4x256xf32>
    %125 = tpu.matmul %124, %122, %cst_85 {dimension_numbers = #tpu.dot_dimension_numbers<[1], [0], [0], [1], [0, 0, 1, 1], [], []>} : vector<4x4xf32>, vector<4x256xf32>, vector<4x256xf32> -> vector<4x256xf32>
    %126 = arith.addf %119, %125 : vector<4x256xf32>
    %c239_i32_86 = arith.constant 239 : i32
    %127 = tpu.dynamic_rotate %72 by %c239_i32_86 dim 1 : vector<4x256xf32>, i32 -> vector<4x256xf32>
    %128 = vector.broadcast %8 : vector<1x256xf32> to vector<4x256xf32>
    %129 = arith.mulf %127, %128 : vector<4x256xf32>
    %c8_87 = arith.constant 8 : index
    %c0_88 = arith.constant 0 : index
    %c0_89 = arith.constant 0 : index
    %130 = vector.load %arg4[%c8_87, %c0_88, %c0_89] : memref<9x4x4xf32, #tpu.memory_space<vmem>>, vector<1x4x4xf32>
    %131 = vector.shape_cast %130 : vector<1x4x4xf32> to vector<4x4xf32>
    %cst_90 = arith.constant dense<0.000000e+00> : vector<4x256xf32>
    %132 = tpu.matmul %131, %129, %cst_90 {dimension_numbers = #tpu.dot_dimension_numbers<[1], [0], [0], [1], [0, 0, 1, 1], [], []>} : vector<4x4xf32>, vector<4x256xf32>, vector<4x256xf32> -> vector<4x256xf32>
    %133 = arith.addf %126, %132 : vector<4x256xf32>
    %cst_91 = arith.constant 0.000000e+00 : f32
    %134 = vector.broadcast %cst_91 : f32 to vector<4x256xf32>
    %135 = arith.maximumf %133, %134 : vector<4x256xf32>
    %c17_i32_92 = arith.constant 17 : i32
    %136 = tpu.dynamic_rotate %135 by %c17_i32_92 dim 1 : vector<4x256xf32>, i32 -> vector<4x256xf32>
    %137 = vector.broadcast %0 : vector<1x256xf32> to vector<4x256xf32>
    %138 = arith.mulf %136, %137 : vector<4x256xf32>
    %c0_93 = arith.constant 0 : index
    %c0_94 = arith.constant 0 : index
    %c0_95 = arith.constant 0 : index
    %139 = vector.load %arg5[%c0_93, %c0_94, %c0_95] : memref<9x5x4xf32, #tpu.memory_space<vmem>>, vector<1x5x4xf32>
    %140 = vector.shape_cast %139 : vector<1x5x4xf32> to vector<5x4xf32>
    %cst_96 = arith.constant dense<0.000000e+00> : vector<5x256xf32>
    %141 = tpu.matmul %140, %138, %cst_96 {dimension_numbers = #tpu.dot_dimension_numbers<[1], [0], [0], [1], [0, 0, 1, 1], [], []>} : vector<5x4xf32>, vector<4x256xf32>, vector<5x256xf32> -> vector<5x256xf32>
    %c16_i32_97 = arith.constant 16 : i32
    %142 = tpu.dynamic_rotate %135 by %c16_i32_97 dim 1 : vector<4x256xf32>, i32 -> vector<4x256xf32>
    %143 = vector.broadcast %1 : vector<1x256xf32> to vector<4x256xf32>
    %144 = arith.mulf %142, %143 : vector<4x256xf32>
    %c1_98 = arith.constant 1 : index
    %c0_99 = arith.constant 0 : index
    %c0_100 = arith.constant 0 : index
    %145 = vector.load %arg5[%c1_98, %c0_99, %c0_100] : memref<9x5x4xf32, #tpu.memory_space<vmem>>, vector<1x5x4xf32>
    %146 = vector.shape_cast %145 : vector<1x5x4xf32> to vector<5x4xf32>
    %cst_101 = arith.constant dense<0.000000e+00> : vector<5x256xf32>
    %147 = tpu.matmul %146, %144, %cst_101 {dimension_numbers = #tpu.dot_dimension_numbers<[1], [0], [0], [1], [0, 0, 1, 1], [], []>} : vector<5x4xf32>, vector<4x256xf32>, vector<5x256xf32> -> vector<5x256xf32>
    %148 = arith.addf %141, %147 : vector<5x256xf32>
    %c15_i32_102 = arith.constant 15 : i32
    %149 = tpu.dynamic_rotate %135 by %c15_i32_102 dim 1 : vector<4x256xf32>, i32 -> vector<4x256xf32>
    %150 = vector.broadcast %2 : vector<1x256xf32> to vector<4x256xf32>
    %151 = arith.mulf %149, %150 : vector<4x256xf32>
    %c2_103 = arith.constant 2 : index
    %c0_104 = arith.constant 0 : index
    %c0_105 = arith.constant 0 : index
    %152 = vector.load %arg5[%c2_103, %c0_104, %c0_105] : memref<9x5x4xf32, #tpu.memory_space<vmem>>, vector<1x5x4xf32>
    %153 = vector.shape_cast %152 : vector<1x5x4xf32> to vector<5x4xf32>
    %cst_106 = arith.constant dense<0.000000e+00> : vector<5x256xf32>
    %154 = tpu.matmul %153, %151, %cst_106 {dimension_numbers = #tpu.dot_dimension_numbers<[1], [0], [0], [1], [0, 0, 1, 1], [], []>} : vector<5x4xf32>, vector<4x256xf32>, vector<5x256xf32> -> vector<5x256xf32>
    %155 = arith.addf %148, %154 : vector<5x256xf32>
    %c1_i32_107 = arith.constant 1 : i32
    %156 = tpu.dynamic_rotate %135 by %c1_i32_107 dim 1 : vector<4x256xf32>, i32 -> vector<4x256xf32>
    %157 = vector.broadcast %3 : vector<1x256xf32> to vector<4x256xf32>
    %158 = arith.mulf %156, %157 : vector<4x256xf32>
    %c3_108 = arith.constant 3 : index
    %c0_109 = arith.constant 0 : index
    %c0_110 = arith.constant 0 : index
    %159 = vector.load %arg5[%c3_108, %c0_109, %c0_110] : memref<9x5x4xf32, #tpu.memory_space<vmem>>, vector<1x5x4xf32>
    %160 = vector.shape_cast %159 : vector<1x5x4xf32> to vector<5x4xf32>
    %cst_111 = arith.constant dense<0.000000e+00> : vector<5x256xf32>
    %161 = tpu.matmul %160, %158, %cst_111 {dimension_numbers = #tpu.dot_dimension_numbers<[1], [0], [0], [1], [0, 0, 1, 1], [], []>} : vector<5x4xf32>, vector<4x256xf32>, vector<5x256xf32> -> vector<5x256xf32>
    %162 = arith.addf %155, %161 : vector<5x256xf32>
    %163 = vector.broadcast %4 : vector<1x256xf32> to vector<4x256xf32>
    %164 = arith.mulf %135, %163 : vector<4x256xf32>
    %c4_112 = arith.constant 4 : index
    %c0_113 = arith.constant 0 : index
    %c0_114 = arith.constant 0 : index
    %165 = vector.load %arg5[%c4_112, %c0_113, %c0_114] : memref<9x5x4xf32, #tpu.memory_space<vmem>>, vector<1x5x4xf32>
    %166 = vector.shape_cast %165 : vector<1x5x4xf32> to vector<5x4xf32>
    %cst_115 = arith.constant dense<0.000000e+00> : vector<5x256xf32>
    %167 = tpu.matmul %166, %164, %cst_115 {dimension_numbers = #tpu.dot_dimension_numbers<[1], [0], [0], [1], [0, 0, 1, 1], [], []>} : vector<5x4xf32>, vector<4x256xf32>, vector<5x256xf32> -> vector<5x256xf32>
    %168 = arith.addf %162, %167 : vector<5x256xf32>
    %c255_i32_116 = arith.constant 255 : i32
    %169 = tpu.dynamic_rotate %135 by %c255_i32_116 dim 1 : vector<4x256xf32>, i32 -> vector<4x256xf32>
    %170 = vector.broadcast %5 : vector<1x256xf32> to vector<4x256xf32>
    %171 = arith.mulf %169, %170 : vector<4x256xf32>
    %c5_117 = arith.constant 5 : index
    %c0_118 = arith.constant 0 : index
    %c0_119 = arith.constant 0 : index
    %172 = vector.load %arg5[%c5_117, %c0_118, %c0_119] : memref<9x5x4xf32, #tpu.memory_space<vmem>>, vector<1x5x4xf32>
    %173 = vector.shape_cast %172 : vector<1x5x4xf32> to vector<5x4xf32>
    %cst_120 = arith.constant dense<0.000000e+00> : vector<5x256xf32>
    %174 = tpu.matmul %173, %171, %cst_120 {dimension_numbers = #tpu.dot_dimension_numbers<[1], [0], [0], [1], [0, 0, 1, 1], [], []>} : vector<5x4xf32>, vector<4x256xf32>, vector<5x256xf32> -> vector<5x256xf32>
    %175 = arith.addf %168, %174 : vector<5x256xf32>
    %c241_i32_121 = arith.constant 241 : i32
    %176 = tpu.dynamic_rotate %135 by %c241_i32_121 dim 1 : vector<4x256xf32>, i32 -> vector<4x256xf32>
    %177 = vector.broadcast %6 : vector<1x256xf32> to vector<4x256xf32>
    %178 = arith.mulf %176, %177 : vector<4x256xf32>
    %c6_122 = arith.constant 6 : index
    %c0_123 = arith.constant 0 : index
    %c0_124 = arith.constant 0 : index
    %179 = vector.load %arg5[%c6_122, %c0_123, %c0_124] : memref<9x5x4xf32, #tpu.memory_space<vmem>>, vector<1x5x4xf32>
    %180 = vector.shape_cast %179 : vector<1x5x4xf32> to vector<5x4xf32>
    %cst_125 = arith.constant dense<0.000000e+00> : vector<5x256xf32>
    %181 = tpu.matmul %180, %178, %cst_125 {dimension_numbers = #tpu.dot_dimension_numbers<[1], [0], [0], [1], [0, 0, 1, 1], [], []>} : vector<5x4xf32>, vector<4x256xf32>, vector<5x256xf32> -> vector<5x256xf32>
    %182 = arith.addf %175, %181 : vector<5x256xf32>
    %c240_i32_126 = arith.constant 240 : i32
    %183 = tpu.dynamic_rotate %135 by %c240_i32_126 dim 1 : vector<4x256xf32>, i32 -> vector<4x256xf32>
    %184 = vector.broadcast %7 : vector<1x256xf32> to vector<4x256xf32>
    %185 = arith.mulf %183, %184 : vector<4x256xf32>
    %c7_127 = arith.constant 7 : index
    %c0_128 = arith.constant 0 : index
    %c0_129 = arith.constant 0 : index
    %186 = vector.load %arg5[%c7_127, %c0_128, %c0_129] : memref<9x5x4xf32, #tpu.memory_space<vmem>>, vector<1x5x4xf32>
    %187 = vector.shape_cast %186 : vector<1x5x4xf32> to vector<5x4xf32>
    %cst_130 = arith.constant dense<0.000000e+00> : vector<5x256xf32>
    %188 = tpu.matmul %187, %185, %cst_130 {dimension_numbers = #tpu.dot_dimension_numbers<[1], [0], [0], [1], [0, 0, 1, 1], [], []>} : vector<5x4xf32>, vector<4x256xf32>, vector<5x256xf32> -> vector<5x256xf32>
    %189 = arith.addf %182, %188 : vector<5x256xf32>
    %c239_i32_131 = arith.constant 239 : i32
    %190 = tpu.dynamic_rotate %135 by %c239_i32_131 dim 1 : vector<4x256xf32>, i32 -> vector<4x256xf32>
    %191 = vector.broadcast %8 : vector<1x256xf32> to vector<4x256xf32>
    %192 = arith.mulf %190, %191 : vector<4x256xf32>
    %c8_132 = arith.constant 8 : index
    %c0_133 = arith.constant 0 : index
    %c0_134 = arith.constant 0 : index
    %193 = vector.load %arg5[%c8_132, %c0_133, %c0_134] : memref<9x5x4xf32, #tpu.memory_space<vmem>>, vector<1x5x4xf32>
    %194 = vector.shape_cast %193 : vector<1x5x4xf32> to vector<5x4xf32>
    %cst_135 = arith.constant dense<0.000000e+00> : vector<5x256xf32>
    %195 = tpu.matmul %194, %192, %cst_135 {dimension_numbers = #tpu.dot_dimension_numbers<[1], [0], [0], [1], [0, 0, 1, 1], [], []>} : vector<5x4xf32>, vector<4x256xf32>, vector<5x256xf32> -> vector<5x256xf32>
    %196 = arith.addf %189, %195 : vector<5x256xf32>
    %197 = tpu.iota {dimensions = array<i32: 0>} : vector<5x256xi32>
    %c4_i32 = arith.constant 4 : i32
    %198 = vector.broadcast %c4_i32 : i32 to vector<5x256xi32>
    %199 = arith.cmpi eq, %197, %198 : vector<5x256xi32>
    %200 = arith.negf %196 : vector<5x256xf32>
    %201 = math.exp %200 : vector<5x256xf32>
    %cst_136 = arith.constant 1.000000e+00 : f32
    %202 = vector.broadcast %cst_136 : f32 to vector<5x256xf32>
    %203 = arith.addf %202, %201 : vector<5x256xf32>
    %204 = arith.divf %202, %203 : vector<5x256xf32>
    %205 = arith.select %199, %204, %196 : vector<5x256xi1>, vector<5x256xf32>
    %c0_137 = arith.constant 0 : index
    %c0_138 = arith.constant 0 : index
    %206 = vector.load %arg6[%c0_137, %c0_138] : memref<5x256xf32, #tpu.memory_space<vmem>>, vector<5x256xf32>
    tpu.vector_store %arg6[%c0_137, %c0_138], %205 {strides = array<i32>} : memref<5x256xf32, #tpu.memory_space<vmem>>, vector<5x256xf32>,
    return
  }
  func.func @transform_0(%arg0: i32) -> (i32, i32) {
    %c0_i32 = arith.constant 0 : i32
    %c0_i32_0 = arith.constant 0 : i32
    %c0_i32_1 = arith.constant 0 : i32
    return %c0_i32, %c0_i32_0 : i32, i32
  }
  func.func @transform_1(%arg0: i32) -> (i32, i32) {
    %c0_i32 = arith.constant 0 : i32
    %c0_i32_0 = arith.constant 0 : i32
    return %c0_i32, %arg0 : i32, i32
  }
  func.func @transform_2(%arg0: i32) -> (i32, i32, i32) {
    %c0_i32 = arith.constant 0 : i32
    %c0_i32_0 = arith.constant 0 : i32
    %c0_i32_1 = arith.constant 0 : i32
    %c0_i32_2 = arith.constant 0 : i32
    return %c0_i32, %c0_i32_0, %c0_i32_1 : i32, i32, i32
  }
  func.func @transform_3(%arg0: i32) -> (i32, i32, i32) {
    %c0_i32 = arith.constant 0 : i32
    %c0_i32_0 = arith.constant 0 : i32
    %c0_i32_1 = arith.constant 0 : i32
    %c0_i32_2 = arith.constant 0 : i32
    return %c0_i32, %c0_i32_0, %c0_i32_1 : i32, i32, i32
  }
  func.func @transform_4(%arg0: i32) -> (i32, i32, i32) {
    %c0_i32 = arith.constant 0 : i32
    %c0_i32_0 = arith.constant 0 : i32
    %c0_i32_1 = arith.constant 0 : i32
    %c0_i32_2 = arith.constant 0 : i32
    return %c0_i32, %c0_i32_0, %c0_i32_1 : i32, i32, i32
  }
  func.func @transform_5(%arg0: i32) -> (i32, i32) {
    %c0_i32 = arith.constant 0 : i32
    %c0_i32_0 = arith.constant 0 : i32
    return %c0_i32, %arg0 : i32, i32
  }
}

</mosaic_0001>

<bundles_post_ra>
// kernel: tpu_custom_call.1
= control target key start
LH: loop header
LB: loop body
LE: loop exit
PB: predicated region body
PF: predicated region fallthrough
CT: control target
= control target key end

     0   :  { %10 = vsyncpa [#allocation3], 0  ;;  %s2956_s0 = inlined_call_operand.vmem [shape: f32[9,256], index: 0, kind: input, shape index: {}]   ;;  %s2957_s1 = inlined_call_operand.vmem [shape: f32[4,512], index: 1, kind: input, shape index: {}]   ;;  %s2958_s2 = inlined_call_operand.vmem [shape: f32[9,4,4], index: 2, kind: input, shape index: {}]   ;;  %s2959_s3 = inlined_call_operand.vmem [shape: f32[9,4,4], index: 3, kind: input, shape index: {}]   ;;  %s2960_s4 = inlined_call_operand.vmem [shape: f32[9,5,4], index: 4, kind: input, shape index: {}]   ;;  %s2961_s5 = inlined_call_operand.hbm [shape: f32[5,512], index: 5, kind: output, shape index: {}]  }
   0x1   :  { %12 = vsyncpa [#allocation3 + $0x1], 0  ;;  %s2397_s18 = smov 0   ;;  %s2399_s19 = smov 0  }
   0x2   :  { %s2401_s20 = smov 0   ;;  %s2403_s21 = smov 0  }
   0x3 LB: > { %s2418_s22 = sadd.s32 4294967295, %s2357_s21   ;;  %s2085_s23 = sadd.s32 4294967294, %s2357_s21   ;;  %s2357_s21 = sphi %s2403_s21, %s2967_s21   ;;  %s2353_s20 = sphi %s2401_s20, %s2966_s20   ;;  %s2349_s19 = sphi %s2399_s19, %s2965_s19   ;;  %s2345_s18 = sphi %s2397_s18, %s2964_s18  }
   0x4   : > { %s2422_s24 = sadd.s32 1, %s2357_s21   ;;  %s135_s25 = sadd.s32 1, %s2353_s20 }
   0x5   : > { %s132_s26 = ssub.s32 %s2357_s21, %s2422_s24  ;;  %p145_p0 = scmp.ne.s32.totalorder %s2353_s20, %s2349_s19 }
   0x6   : > { %p133_p1 = scmp.eq.s32.totalorder %s132_s26, 0  ;;  %p146_p2 = scmp.eq.s32.totalorder %s2418_s22, 1 }
   0x7   : > { %p151_p3 = scmp.ne.s32.totalorder %s2349_s19, %s2345_s18  ;;  %p152_p4 = scmp.eq.s32.totalorder %s2085_s23, 1 }
   0x8   : > { %s2433_s27 = scalar_select %p133_p1, %s2353_s20, %s135_s25  }
   0x9   : > { %p2435_p5 = por %p146_p2, %p145_p0  ;;  %p2439_p6 = por %p152_p4, %p151_p3 }
   0xa   : > { %p2088_p7 = scmp.ge.s32.totalorder %s2357_s21, 1  ;;  %p191_p8 = scmp.lt.s32.totalorder %s2357_s21, 3 }
   0xc   : > { %p192_p9 = pnand %p2088_p7, %p191_p8 }
   0xd   : > { %s2090_s30 = sshll.u32 (!%p192_p9), %s2418_s22, 1  ;;  %s2359_s10 = smov (!%p192_p9), 17  }
   0xe   : > { %195 = sbr.rel (%p192_p9) target bundleno = 957 (0x3bd), region = 40  ;;  %p220_p10 = scmp.lt.s32.totalorder (!%p192_p9), %s2090_s30, 3 }
   0xf   : > { %s2360_s13 = smov (!%p192_p9), 16   ;;  %s2361_s14 = smov (!%p192_p9), 15  }
  0x10   : > { %s2362_s15 = smov (!%p192_p9), 1   ;;  %s2363_s16 = smov (!%p192_p9), 127  }
  0x11   : > { %s2364_s17 = smov (!%p192_p9), 113   ;;  %s2365_s23 = smov (!%p192_p9), 112  }
  0x12   : > { %s2366_s25 = smov (!%p192_p9), 111   ;;  %s2315_s7 = scalar_lea.hbm (!%p192_p9), %s2961_s5, 32 }
  0x13   : > { %s2969_s30 = smov (!%p220_p10, %s2090_s30), 3  ;;  %v2095_v3 = vld [vmem:[%s2956_s0 + $0x4] ss:$8 sm:$0x3]  ;;  %vm292_vm0 = vcmask 1043456   ;;  %v254_v25 = vlaneseq  ;;  %vm288_vm2 = vcmask 31744  }
  0x14   : > { %s2091_s6 = sshll.u32 %s2969_s30, 2  ;;  %v2455_v6 = vperm.slane %v2095_v3, 1  ;;  %v2457_v7 = vperm.slane %v2095_v3, 0  ;;  %v226_v29 = vld [vmem:[%s2956_s0] ss:$8 sm:$0x3] }
  0x15   : > { %s223_s9 = scalar_lea.vmem %s2957_s1, %s2091_s6  ;;  %v2480_v27 = vand.u32 127, %v254_v25  ;;  %v2486_v30 = vperm.slane %v226_v29, 0  ;;  %v2488_v31 = vperm.slane %v226_v29, 1  ;;  %v266_v37 = vld [vmem:[%s2958_s2] sm:$0xf] }
  0x16   : > { %v243_v0 = vld [vmem:[%s223_s9] sm:$0xff]  ;;  %v537_v8 = vrot.slane %v2455_v6, 4  ;;  %v2119_v3 = vld [vmem:[%s2958_s2 + $0x10] sm:$0xf] }
  0x17   : > { %245 = vst [vmem:[#allocation1] ss:$2 sm:$0xff] %v243_v0  ;;  %vm256_vm1 = vcmp.lt.s32.totalorder %v2480_v27, 17  ;;  %v2092_v39 = vld [vmem:[%s2956_s0 + $0x1] ss:$8 sm:$0x3] }
  0x18   : > { %v538_v11 = vsel %vm292_vm0, %v2457_v7, %v537_v8  ;;  %v2093_v40 = vld [vmem:[%s2956_s0 + $0x2] ss:$8 sm:$0x3]  ;;  %vm397_vm3 = vcmp.lt.s32.totalorder %v2480_v27, 15  ;;  %vm276_vm4 = vcmp.lt.s32.totalorder %v2480_v27, 16  ;;  %v2511_v42 = vperm.slane %v2092_v39, 0 }
  0x19   : > { %v540_v12 = vmul.f32 %v538_v11, %v243_v0  ;;  %v2513_v43 = vperm.slane %v2092_v39, 1  ;;  %v2515_v44 = vperm.slane %v2093_v40, 0  ;;  %v2517_v45 = vperm.slane %v2093_v40, 1  ;;  %v2100_v52 = vld [vmem:[%s2958_s2 + $0x4] sm:$0xf] }
  0x1a   : > { %v2094_v56 = vld [vmem:[%s2956_s0 + $0x3] ss:$8 sm:$0x3]  ;;  %vm469_vm5 = vcmp.lt.s32.totalorder %v2480_v27, 1  ;;  %vm605_vm6 = vcmp.lt.s32.totalorder %v2480_v27, 127  ;;  %vm677_vm7 = vcmp.lt.s32.totalorder %v2480_v27, 113 }
  0x1b   : > { %v2542_v57 = vperm.slane %v2094_v56, 0  ;;  %v2544_v58 = vperm.slane %v2094_v56, 1  ;;  %vm749_vm8 = vcmp.lt.s32.totalorder %v2480_v27, 112  ;;  %v2134_v39 = vld [vmem:[%s2958_s2 + $0x1c] sm:$0xf]  ;;  %vm821_vm9 = vcmp.lt.s32.totalorder %v2480_v27, 111 }
  0x1c   : > { %v2099_v40 = vld [vmem:[%s2956_s0 + $0x10] ss:$8 sm:$0x3]  ;;  %v2227_v27 = vld [vmem:[%s2960_s4 + $0x40] sm:$0x1f] }
  0x1e   : > { %v246_v1 = vld.sshfl [vmem:[#allocation1] sm:$0xff pattern:$0x75316420]  ;;  %v247_v2 = vld.sshfl [vmem:[#allocation1 + $0x8] sm:$0xff pattern:$0x75316420] }
  0x1f   : > { %250 = vrot.lane.b32.xlu0 %v246_v1, %s2359_s10  ;;  %267 = vst [vmem:[#allocation1] ss:$2 sm:$0xff] %v243_v0  ;;  %v2109_v1 = vld [vmem:[%s2958_s2 + $0x8] sm:$0xf] }
  0x26   : > { %v268_v4 = vld.sshfl [vmem:[#allocation1] sm:$0xff pattern:$0x75316420]  ;;  %v269_v5 = vld.sshfl [vmem:[#allocation1 + $0x8] sm:$0xff pattern:$0x75316420] }
  0x27   : > { %272 = vrot.lane.b32.xlu1 %v268_v4, %s2360_s13  ;;  %252 = vrot.lane.b32.xlu0 %v247_v2, %s2359_s10  ;;  %388 = vst [vmem:[#allocation1] ss:$2 sm:$0xff] %v243_v0  ;;  %v2114_v2 = vld [vmem:[%s2958_s2 + $0xc] sm:$0xf] }
  0x28   : > { %v2096_v4 = vld [vmem:[%s2956_s0 + $0x5] ss:$8 sm:$0x3] }
  0x29   : > { %v2578_v8 = vperm.slane %v2096_v4, 0 }
  0x2e   : > { %v389_v9 = vld.sshfl [vmem:[#allocation1] sm:$0xff pattern:$0x75316420]  ;;  %v390_v10 = vld.sshfl [vmem:[#allocation1 + $0x8] sm:$0xff pattern:$0x75316420] }
  0x2f   : > { %274 = vrot.lane.b32.xlu1 %v269_v5, %s2360_s13  ;;  %460 = vst [vmem:[#allocation1] ss:$2 sm:$0xff] %v243_v0  ;;  %393 = vrot.lane.b32.xlu2 %v389_v9, %s2361_s14  ;;  %v2580_v9 = vperm.slane %v2096_v4, 1 }
  0x36   : > { %v462_v13 = vld.sshfl [vmem:[#allocation1 + $0x8] sm:$0xff pattern:$0x75316420]  ;;  %v461_v14 = vld.sshfl [vmem:[#allocation1] sm:$0xff pattern:$0x75316420] }
  0x37   : > { %467 = vrot.lane.b32.xlu1 %v462_v13, %s2362_s15  ;;  %465 = vrot.lane.b32.xlu0 %v461_v14, %s2362_s15  ;;  %544 = vst [vmem:[#allocation1] ss:$2 sm:$0xff] %v540_v12 }
  0x38   : > { %395 = vrot.lane.b32.xlu2 %v390_v10, %s2361_s14 }
  0x3e   : > { %v2467_v15 = vld.sshfl [vmem:[#allocation1] sm:$0xff pattern:$0x75316420]  ;;  %v2469_v16 = vld.sshfl [vmem:[#allocation1 + $0x8] sm:$0xff pattern:$0x75316420] }
  0x3f   : > { %596 = vst [vmem:[#allocation1] ss:$2 sm:$0xff] %v243_v0 }
  0x46   : > { %v598_v17 = vld.sshfl [vmem:[#allocation1 + $0x8] sm:$0xff pattern:$0x75316420]  ;;  %v597_v18 = vld.sshfl [vmem:[#allocation1] sm:$0xff pattern:$0x75316420] }
  0x47   : > { %603 = vrot.lane.b32.xlu0 %v598_v17, %s2363_s16  ;;  %668 = vst [vmem:[#allocation1] ss:$2 sm:$0xff] %v243_v0  ;;  %601 = vrot.lane.b32.xlu2 %v597_v18, %s2363_s16 }
  0x4e   : > { %v669_v19 = vld.sshfl [vmem:[#allocation1] sm:$0xff pattern:$0x75316420]  ;;  %v670_v20 = vld.sshfl [vmem:[#allocation1 + $0x8] sm:$0xff pattern:$0x75316420] }
  0x4f   : > { %673 = vrot.lane.b32.xlu1 %v669_v19, %s2364_s17  ;;  %740 = vst [vmem:[#allocation1] ss:$2 sm:$0xff] %v243_v0  ;;  %675 = vrot.lane.b32.xlu2 %v670_v20, %s2364_s17 }
  0x56   : > { %v742_v21 = vld.sshfl [vmem:[#allocation1 + $0x8] sm:$0xff pattern:$0x75316420]  ;;  %v741_v22 = vld.sshfl [vmem:[#allocation1] sm:$0xff pattern:$0x75316420] }
  0x57   : > { %747 = vrot.lane.b32.xlu1 %v742_v21, %s2365_s23  ;;  %745 = vrot.lane.b32.xlu0 %v741_v22, %s2365_s23  ;;  %812 = vst [vmem:[#allocation1] ss:$2 sm:$0xff] %v243_v0 }
  0x5e   : > { %v814_v23 = vld.sshfl [vmem:[#allocation1 + $0x8] sm:$0xff pattern:$0x75316420]  ;;  %v813_v24 = vld.sshfl [vmem:[#allocation1] sm:$0xff pattern:$0x75316420] }
  0x5f   : > { %819 = vrot.lane.b32.xlu0 %v814_v23, %s2366_s25  ;;  %817 = vrot.lane.b32.xlu2 %v813_v24, %s2366_s25 }
  0x89   : > { %v394_v28 = vpop.permute.xlu2 %393 }
  0x91   : > { %v251_v26 = vpop.permute.xlu0 %250 }
  0x92   : > { %v396_v41 = vpop.permute.xlu2 %395 }
  0x93   : > { %v398_v46 = vsel %vm397_vm3, %v394_v28, %v396_v41  ;;  %v399_v47 = vsel %vm397_vm3, %v396_v41, %v394_v28  ;;  %v2098_v28 = vld [vmem:[%s2956_s0 + $0x7] ss:$8 sm:$0x3]  ;;  %v2642_v41 = vperm.slane %v2099_v40, 0 }
  0x94   : > { %v405_v54 = vmul.f32 %v2515_v44, %v399_v47  ;;  %v406_v55 = vmul.f32 %v2517_v45, %v398_v46  ;;  %v2621_v29 = vperm.slane %v2098_v28, 0  ;;  %v2644_v46 = vperm.slane %v2099_v40, 1 }
  0x99   : > { %v273_v32 = vpop.permute.xlu1 %272  ;;  %v253_v33 = vpop.permute.xlu0 %252 }
  0x9a   : > { %v257_v34 = vsel %vm256_vm1, %v251_v26, %v253_v33  ;;  %v258_v35 = vsel %vm256_vm1, %v253_v33, %v251_v26  ;;  %v2129_v26 = vld [vmem:[%s2958_s2 + $0x18] sm:$0xf] }
  0x9b   : > { %v264_v36 = vmul.f32 %v2486_v30, %v258_v35  ;;  %v265_v38 = vmul.f32 %v2488_v31, %v257_v34 }
  0x9d   : > { %2105 = vmatpush.msk.msra.mxu2 %vm292_vm0, %v264_v36  ;;  %2107 = vmatpush.msk.msra.mxu3 %vm292_vm0, %v265_v38 }
  0x9e   : > { %2106 = vmatmul.msk.f32.vlgmr.msra.gmra.mxu2 %vm288_vm2, %v266_v37  ;;  %2108 = vmatmul.msk.f32.vlgmr.msra.gmra.mxu3 %vm288_vm2, %v266_v37 }
  0xa1   : > { %v275_v48 = vpop.permute.xlu1 %274  ;;  %v602_v5 = vpop.permute.xlu2 %601 }
  0xa2   : > { %v277_v49 = vsel %vm276_vm4, %v273_v32, %v275_v48  ;;  %v278_v50 = vsel %vm276_vm4, %v275_v48, %v273_v32  ;;  %v2623_v32 = vperm.slane %v2098_v28, 1 }
  0xa3   : > { %v284_v51 = vmul.f32 %v2511_v42, %v278_v50  ;;  %v285_v53 = vmul.f32 %v2513_v43, %v277_v49 }
  0xa5   : > { %2101 = vmatpush.msk.msra.mxu0 %vm292_vm0, %v284_v51  ;;  %2103 = vmatpush.msk.msra.mxu1 %vm292_vm0, %v285_v53  ;;  %v2139_v53 = vld [vmem:[%s2958_s2 + $0x20] sm:$0xf] }
  0xa6   : > { %2102 = vmatmul.msk.f32.vlgmr.msra.gmra.mxu0 %vm288_vm2, %v2100_v52  ;;  %2104 = vmatmul.msk.f32.vlgmr.msra.gmra.mxu1 %vm288_vm2, %v2100_v52 }
  0xa7   : > { %2110 = vmatpush.msk.msrb.mxu0 %vm292_vm0, %v405_v54  ;;  %2112 = vmatpush.msk.msrb.mxu1 %vm292_vm0, %v406_v55 }
  0xa9   : > { %2120 = vmatpush.msk.msra.mxu0 %vm292_vm0, %v2467_v15  ;;  %2122 = vmatpush.msk.msra.mxu1 %vm292_vm0, %v2469_v16  ;;  %v468_v59 = vpop.permute.xlu1 %467  ;;  %v466_v60 = vpop.permute.xlu0 %465  ;;  %v2124_v15 = vld [vmem:[%s2958_s2 + $0x14] sm:$0xf]  ;;  %v2097_v16 = vld [vmem:[%s2956_s0 + $0x6] ss:$8 sm:$0x3] }
  0xaa   : > { %v470_v61 = vsel %vm469_vm5, %v466_v60, %v468_v59  ;;  %v471_v62 = vsel %vm469_vm5, %v468_v59, %v466_v60  ;;  %v676_v17 = vpop.permute.xlu2 %675  ;;  %v2600_v18 = vperm.slane %v2097_v16, 0  ;;  %v2602_v19 = vperm.slane %v2097_v16, 1 }
  0xab   : > { %v477_v63 = vmul.f32 %v2542_v57, %v471_v62  ;;  %v478_v0 = vmul.f32 %v2544_v58, %v470_v61 }
  0xad   : > { %2115 = vmatpush.msk.msrb.mxu2 %vm292_vm0, %v477_v63  ;;  %2117 = vmatpush.msk.msrb.mxu3 %vm292_vm0, %v478_v0 }
  0xae   : > { %2111 = vmatmul.msk.f32.vlgmr.msrb.gmra.mxu0 %vm288_vm2, %v2109_v1  ;;  %2116 = vmatmul.msk.f32.vlgmr.msrb.gmra.mxu2 %vm288_vm2, %v2114_v2 }
  0xaf   : > { %2113 = vmatmul.msk.f32.vlgmr.msrb.gmra.mxu1 %vm288_vm2, %v2109_v1  ;;  %2118 = vmatmul.msk.f32.vlgmr.msrb.gmra.mxu3 %vm288_vm2, %v2114_v2 }
  0xb6   : > { %2121 = vmatmul.msk.f32.vlgmr.msra.gmra.mxu0 %vm288_vm2, %v2119_v3 }
  0xb7   : > { %2123 = vmatmul.msk.f32.vlgmr.msra.gmra.mxu1 %vm288_vm2, %v2119_v3 }
  0xb9   : > { %v604_v10 = vpop.permute.xlu0 %603  ;;  %v818_v47 = vpop.permute.xlu2 %817 }
  0xba   : > { %v606_v11 = vsel %vm605_vm6, %v602_v5, %v604_v10  ;;  %v607_v12 = vsel %vm605_vm6, %v604_v10, %v602_v5 }
  0xbb   : > { %v613_v13 = vmul.f32 %v2578_v8, %v606_v11  ;;  %v614_v14 = vmul.f32 %v2580_v9, %v607_v12 }
  0xbd   : > { %2125 = vmatpush.msk.msra.mxu2 %vm292_vm0, %v613_v13  ;;  %2127 = vmatpush.msk.msra.mxu3 %vm292_vm0, %v614_v14 }
  0xbe   : > { %2126 = vmatmul.msk.f32.vlgmr.msra.gmra.mxu2 %vm288_vm2, %v2124_v15  ;;  %2128 = vmatmul.msk.f32.vlgmr.msra.gmra.mxu3 %vm288_vm2, %v2124_v15 }
  0xc1   : > { %v674_v20 = vpop.permute.xlu1 %673 }
  0xc2   : > { %v678_v21 = vsel %vm677_vm7, %v674_v20, %v676_v17  ;;  %v679_v22 = vsel %vm677_vm7, %v676_v17, %v674_v20 }
  0xc3   : > { %v685_v23 = vmul.f32 %v2600_v18, %v678_v21  ;;  %v686_v24 = vmul.f32 %v2602_v19, %v679_v22 }
  0xc5   : > { %2130 = vmatpush.msk.msrb.mxu0 %vm292_vm0, %v685_v23  ;;  %2132 = vmatpush.msk.msrb.mxu1 %vm292_vm0, %v686_v24 }
  0xc6   : > { %2131 = vmatmul.msk.f32.vlgmr.msrb.gmra.mxu0 %vm288_vm2, %v2129_v26  ;;  %2133 = vmatmul.msk.f32.vlgmr.msrb.gmra.mxu1 %vm288_vm2, %v2129_v26 }
  0xc9   : > { %v748_v33 = vpop.permute.xlu1 %747  ;;  %v746_v34 = vpop.permute.xlu0 %745 }
  0xca   : > { %v750_v35 = vsel %vm749_vm8, %v746_v34, %v748_v33  ;;  %v751_v36 = vsel %vm749_vm8, %v748_v33, %v746_v34 }
  0xcb   : > { %v757_v37 = vmul.f32 %v2621_v29, %v750_v35  ;;  %v758_v38 = vmul.f32 %v2623_v32, %v751_v36 }
  0xcd   : > { %2135 = vmatpush.msk.msrb.mxu2 %vm292_vm0, %v757_v37  ;;  %2137 = vmatpush.msk.msrb.mxu3 %vm292_vm0, %v758_v38 }
  0xce   : > { %2136 = vmatmul.msk.f32.vlgmr.msrb.gmra.mxu2 %vm288_vm2, %v2134_v39  ;;  %2138 = vmatmul.msk.f32.vlgmr.msrb.gmra.mxu3 %vm288_vm2, %v2134_v39 }
  0xd1   : > { %v820_v48 = vpop.permute.xlu0 %819 }
  0xd2   : > { %v822_v49 = vsel %vm821_vm9, %v818_v47, %v820_v48  ;;  %v823_v50 = vsel %vm821_vm9, %v820_v48, %v818_v47 }
  0xd3   : > { %v829_v51 = vmul.f32 %v2642_v41, %v822_v49  ;;  %v830_v52 = vmul.f32 %v2644_v46, %v823_v50 }
  0xd5   : > { %2140 = vmatpush.msk.msra.mxu0 %vm292_vm0, %v829_v51  ;;  %2142 = vmatpush.msk.msra.mxu1 %vm292_vm0, %v830_v52 }
  0xd6   : > { %2141 = vmatmul.msk.f32.vlgmr.msra.gmra.mxu0 %vm288_vm2, %v2139_v53  ;;  %2143 = vmatmul.msk.f32.vlgmr.msra.gmra.mxu1 %vm288_vm2, %v2139_v53 }
 0x121   : > { %v385_v56 = vpop.f32.mrf.mxu3  ;;  %v365_v59 = vpop.f32.mrf.mxu2 }
 0x123   : > { %v336_v54 = vpop.f32.mrf.mxu1  ;;  %v316_v55 = vpop.f32.mrf.mxu0 }
 0x124   : > { %v386_v62 = vadd.f32 %v385_v56, %v336_v54  ;;  %v366_v63 = vadd.f32 %v365_v59, %v316_v55  ;;  %v2144_v54 = vld [vmem:[%s2959_s3 + $0x4] sm:$0xf] }
 0x12b   : > { %v435_v61 = vpop.f32.mrf.mxu0 }
 0x12c   : > { %v455_v60 = vpop.f32.mrf.mxu1  ;;  %v458_v4 = vadd.f32 %v435_v61, %v366_v63 }
 0x12d   : > { %v459_v1 = vadd.f32 %v455_v60, %v386_v62 }
 0x131   : > { %v507_v2 = vpop.f32.mrf.mxu2 }
 0x132   : > { %v527_v0 = vpop.f32.mrf.mxu3  ;;  %v530_v11 = vadd.f32 %v507_v2, %v458_v4  ;;  %v2153_v4 = vld [vmem:[%s2959_s3 + $0x8] sm:$0xf] }
 0x133   : > { %v571_v5 = vpop.f32.mrf.mxu0  ;;  %v531_v10 = vadd.f32 %v527_v0, %v459_v1 }
 0x134   : > { %v591_v3 = vpop.f32.mrf.mxu1  ;;  %v594_v15 = vadd.f32 %v571_v5, %v530_v11 }
 0x135   : > { %v595_v12 = vadd.f32 %v591_v3, %v531_v10  ;;  %v894_v3 = vld [vmem:[%s2959_s3] sm:$0xf] }
 0x141   : > { %v643_v13 = vpop.f32.mrf.mxu2  ;;  %v663_v14 = vpop.f32.mrf.mxu3 }
 0x142   : > { %v666_v20 = vadd.f32 %v643_v13, %v594_v15  ;;  %v667_v21 = vadd.f32 %v663_v14, %v595_v12 }
 0x143   : > { %v715_v16 = vpop.f32.mrf.mxu0  ;;  %v735_v17 = vpop.f32.mrf.mxu1 }
 0x144   : > { %v738_v22 = vadd.f32 %v715_v16, %v666_v20  ;;  %v739_v23 = vadd.f32 %v735_v17, %v667_v21  ;;  %v2158_v20 = vld [vmem:[%s2959_s3 + $0xc] sm:$0xf]  ;;  %v2163_v21 = vld [vmem:[%s2959_s3 + $0x10] sm:$0xf] }
 0x151   : > { %v787_v24 = vpop.f32.mrf.mxu2  ;;  %v807_v26 = vpop.f32.mrf.mxu3 }
 0x152   : > { %v810_v28 = vadd.f32 %v787_v24, %v738_v22  ;;  %v811_v33 = vadd.f32 %v807_v26, %v739_v23 }
 0x153   : > { %v859_v34 = vpop.f32.mrf.mxu0  ;;  %v879_v35 = vpop.f32.mrf.mxu1 }
 0x154   : > { %v882_v36 = vadd.f32 %v859_v34, %v810_v28  ;;  %v883_v37 = vadd.f32 %v879_v35, %v811_v33 }
 0x156   : > { %v884_v38 = vmax.f32 %v882_v36, 0.0  ;;  %v885_v39 = vmax.f32 %v883_v37, 0.0 }
 0x158   : > { %897 = vrot.lane.b32.xlu2 %v885_v39, %s2360_s13  ;;  %1003 = vrot.lane.b32.xlu0 %v884_v38, %s2361_s14  ;;  %v1125_v10 = vmul.f32 %v884_v38, %v2457_v7  ;;  %v1126_v11 = vmul.f32 %v885_v39, %v2455_v6 }
 0x159   : > { %895 = vrot.lane.b32.xlu1 %v884_v38, %s2360_s13 }
 0x160   : > { %886 = vrot.lane.b32.xlu2 %v884_v38, %s2359_s10  ;;  %888 = vrot.lane.b32.xlu0 %v885_v39, %s2359_s10 }
 0x161   : > { %1005 = vrot.lane.b32.xlu1 %v885_v39, %s2361_s14 }
 0x168   : > { %1066 = vrot.lane.b32.xlu2 %v885_v39, %s2362_s15  ;;  %1241 = vrot.lane.b32.xlu0 %v884_v38, %s2364_s17 }
 0x169   : > { %1064 = vrot.lane.b32.xlu1 %v884_v38, %s2362_s15 }
 0x170   : > { %1180 = vrot.lane.b32.xlu2 %v884_v38, %s2363_s16  ;;  %1182 = vrot.lane.b32.xlu0 %v885_v39, %s2363_s16 }
 0x171   : > { %1243 = vrot.lane.b32.xlu1 %v885_v39, %s2364_s17 }
 0x178   : > { %1365 = vrot.lane.b32.xlu2 %v885_v39, %s2366_s25  ;;  %1302 = vrot.lane.b32.xlu0 %v884_v38, %s2365_s23 }
 0x179   : > { %1363 = vrot.lane.b32.xlu1 %v884_v38, %s2366_s25 }
 0x181   : > { %1304 = vrot.lane.b32.xlu1 %v885_v39, %s2365_s23  ;;  %v2168_v39 = vld [vmem:[%s2959_s3 + $0x14] sm:$0xf] }
 0x1b2   : > { %v898_v40 = vpop.permute.xlu2 %897 }
 0x1ba   : > { %v887_v51 = vpop.permute.xlu2 %886 }
 0x1c2   : > { %v1067_v5 = vpop.permute.xlu2 %1066 }
 0x1ca   : > { %v1004_v47 = vpop.permute.xlu0 %1003  ;;  %v1181_v22 = vpop.permute.xlu2 %1180 }
 0x1cb   : > { %v896_v48 = vpop.permute.xlu1 %895 }
 0x1cc   : > { %v899_v49 = vsel %vm276_vm4, %v896_v48, %v898_v40  ;;  %v900_v50 = vsel %vm276_vm4, %v898_v40, %v896_v48  ;;  %v2173_v40 = vld [vmem:[%s2959_s3 + $0x18] sm:$0xf] }
 0x1cd   : > { %v901_v52 = vmul.f32 %v900_v50, %v2511_v42  ;;  %v902_v53 = vmul.f32 %v899_v49, %v2513_v43 }
 0x1cf   : > { %2145 = vmatpush.msk.msra.mxu2 %vm292_vm0, %v901_v52  ;;  %2147 = vmatpush.msk.msra.mxu3 %vm292_vm0, %v902_v53  ;;  %v2183_v53 = vld [vmem:[%s2959_s3 + $0x20] sm:$0xf] }
 0x1d0   : > { %2146 = vmatmul.msk.f32.vlgmr.msra.gmra.mxu2 %vm288_vm2, %v2144_v54  ;;  %2148 = vmatmul.msk.f32.vlgmr.msra.gmra.mxu3 %vm288_vm2, %v2144_v54 }
 0x1d2   : > { %v889_v55 = vpop.permute.xlu0 %888 }
 0x1d3   : > { %v890_v56 = vsel %vm256_vm1, %v887_v51, %v889_v55  ;;  %v891_v59 = vsel %vm256_vm1, %v889_v55, %v887_v51  ;;  %v1006_v60 = vpop.permute.xlu1 %1005 }
 0x1d4   : > { %v892_v61 = vmul.f32 %v891_v59, %v2486_v30  ;;  %v893_v62 = vmul.f32 %v890_v56, %v2488_v31  ;;  %v1007_v63 = vsel %vm397_vm3, %v1004_v47, %v1006_v60  ;;  %v1008_v0 = vsel %vm397_vm3, %v1006_v60, %v1004_v47  ;;  %v1366_v47 = vpop.permute.xlu2 %1365 }
 0x1d5   : > { %v1009_v1 = vmul.f32 %v1008_v0, %v2515_v44  ;;  %v1010_v2 = vmul.f32 %v1007_v63, %v2517_v45 }
 0x1d6   : > { %2149 = vmatpush.msk.msrb.mxu0 %vm292_vm0, %v892_v61  ;;  %2151 = vmatpush.msk.msrb.mxu1 %vm292_vm0, %v893_v62  ;;  %v2178_v62 = vld [vmem:[%s2959_s3 + $0x1c] sm:$0xf] }
 0x1d7   : > { %2154 = vmatpush.msk.msrb.mxu2 %vm292_vm0, %v1009_v1  ;;  %2156 = vmatpush.msk.msrb.mxu3 %vm292_vm0, %v1010_v2 }
 0x1d8   : > { %2152 = vmatmul.msk.f32.vlgmr.msrb.gmra.mxu1 %vm288_vm2, %v894_v3  ;;  %2155 = vmatmul.msk.f32.vlgmr.msrb.gmra.mxu2 %vm288_vm2, %v2153_v4 }
 0x1d9   : > { %2157 = vmatmul.msk.f32.vlgmr.msrb.gmra.mxu3 %vm288_vm2, %v2153_v4  ;;  %2164 = vmatpush.msk.msra.mxu2 %vm292_vm0, %v1125_v10 }
 0x1da   : > { %2166 = vmatpush.msk.msra.mxu3 %vm292_vm0, %v1126_v11  ;;  %2150 = vmatmul.msk.f32.vlgmr.msrb.gmra.mxu0 %vm288_vm2, %v894_v3  ;;  %v1242_v12 = vpop.permute.xlu0 %1241 }
 0x1db   : > { %v1065_v13 = vpop.permute.xlu1 %1064 }
 0x1dc   : > { %v1068_v14 = vsel %vm469_vm5, %v1065_v13, %v1067_v5  ;;  %v1069_v15 = vsel %vm469_vm5, %v1067_v5, %v1065_v13 }
 0x1dd   : > { %v1070_v16 = vmul.f32 %v1069_v15, %v2542_v57  ;;  %v1071_v17 = vmul.f32 %v1068_v14, %v2544_v58 }
 0x1df   : > { %2159 = vmatpush.msk.msra.mxu0 %vm292_vm0, %v1070_v16  ;;  %2161 = vmatpush.msk.msra.mxu1 %vm292_vm0, %v1071_v17 }
 0x1e0   : > { %2162 = vmatmul.msk.f32.vlgmr.msra.gmra.mxu1 %vm288_vm2, %v2158_v20  ;;  %2165 = vmatmul.msk.f32.vlgmr.msra.gmra.mxu2 %vm288_vm2, %v2163_v21 }
 0x1e1   : > { %2167 = vmatmul.msk.f32.vlgmr.msra.gmra.mxu3 %vm288_vm2, %v2163_v21 }
 0x1e2   : > { %2160 = vmatmul.msk.f32.vlgmr.msra.gmra.mxu0 %vm288_vm2, %v2158_v20  ;;  %v1183_v23 = vpop.permute.xlu0 %1182 }
 0x1e3   : > { %v1184_v24 = vsel %vm605_vm6, %v1181_v22, %v1183_v23  ;;  %v1185_v26 = vsel %vm605_vm6, %v1183_v23, %v1181_v22  ;;  %v1244_v28 = vpop.permute.xlu1 %1243 }
 0x1e4   : > { %v1186_v33 = vmul.f32 %v1184_v24, %v2578_v8  ;;  %v1187_v34 = vmul.f32 %v1185_v26, %v2580_v9  ;;  %v1245_v35 = vsel %vm677_vm7, %v1242_v12, %v1244_v28  ;;  %v1246_v36 = vsel %vm677_vm7, %v1244_v28, %v1242_v12 }
 0x1e5   : > { %v1247_v37 = vmul.f32 %v1245_v35, %v2600_v18  ;;  %v1248_v38 = vmul.f32 %v1246_v36, %v2602_v19 }
 0x1e6   : > { %2169 = vmatpush.msk.msrb.mxu0 %vm292_vm0, %v1186_v33  ;;  %2171 = vmatpush.msk.msrb.mxu1 %vm292_vm0, %v1187_v34 }
 0x1e7   : > { %2174 = vmatpush.msk.msrb.mxu2 %vm292_vm0, %v1247_v37  ;;  %2176 = vmatpush.msk.msrb.mxu3 %vm292_vm0, %v1248_v38 }
 0x1e8   : > { %2172 = vmatmul.msk.f32.vlgmr.msrb.gmra.mxu1 %vm288_vm2, %v2168_v39  ;;  %2175 = vmatmul.msk.f32.vlgmr.msrb.gmra.mxu2 %vm288_vm2, %v2173_v40 }
 0x1e9   : > { %2177 = vmatmul.msk.f32.vlgmr.msrb.gmra.mxu3 %vm288_vm2, %v2173_v40 }
 0x1ea   : > { %2170 = vmatmul.msk.f32.vlgmr.msrb.gmra.mxu0 %vm288_vm2, %v2168_v39  ;;  %v1303_v54 = vpop.permute.xlu0 %1302 }
 0x1eb   : > { %v1364_v48 = vpop.permute.xlu1 %1363 }
 0x1ec   : > { %v1367_v49 = vsel %vm821_vm9, %v1364_v48, %v1366_v47  ;;  %v1368_v50 = vsel %vm821_vm9, %v1366_v47, %v1364_v48 }
 0x1ed   : > { %v1369_v51 = vmul.f32 %v1367_v49, %v2642_v41  ;;  %v1370_v52 = vmul.f32 %v1368_v50, %v2644_v46 }
 0x1ef   : > { %2184 = vmatpush.msk.msra.mxu2 %vm292_vm0, %v1369_v51  ;;  %2186 = vmatpush.msk.msra.mxu3 %vm292_vm0, %v1370_v52 }
 0x1f0   : > { %2185 = vmatmul.msk.f32.vlgmr.msra.gmra.mxu2 %vm288_vm2, %v2183_v53 }
 0x1f1   : > { %2187 = vmatmul.msk.f32.vlgmr.msra.gmra.mxu3 %vm288_vm2, %v2183_v53 }
 0x1f3   : > { %v1305_v55 = vpop.permute.xlu1 %1304 }
 0x1f4   : > { %v1306_v56 = vsel %vm749_vm8, %v1303_v54, %v1305_v55  ;;  %v1307_v59 = vsel %vm749_vm8, %v1305_v55, %v1303_v54 }
 0x1f5   : > { %v1308_v60 = vmul.f32 %v1306_v56, %v2621_v29  ;;  %v1309_v61 = vmul.f32 %v1307_v59, %v2623_v32 }
 0x1f7   : > { %2179 = vmatpush.msk.msra.mxu0 %vm292_vm0, %v1308_v60  ;;  %2181 = vmatpush.msk.msra.mxu1 %vm292_vm0, %v1309_v61 }
 0x1f8   : > { %2180 = vmatmul.msk.f32.vlgmr.msra.gmra.mxu0 %vm288_vm2, %v2178_v62  ;;  %2182 = vmatmul.msk.f32.vlgmr.msra.gmra.mxu1 %vm288_vm2, %v2178_v62 }
 0x253   : > { %v931_v63 = vpop.f32.mrf.mxu2  ;;  %v951_v0 = vpop.f32.mrf.mxu3 }
 0x255   : > { %v1000_v1 = vpop.f32.mrf.mxu1 }
 0x256   : > { %v1001_v14 = vadd.f32 %v1000_v1, %v951_v0 }
 0x257   : > { %v980_v2 = vpop.f32.mrf.mxu0 }
 0x258   : > { %v981_v5 = vadd.f32 %v980_v2, %v931_v63 }
 0x25b   : > { %v1039_v3 = vpop.f32.mrf.mxu2 }
 0x25c   : > { %v1059_v4 = vpop.f32.mrf.mxu3  ;;  %v1062_v15 = vadd.f32 %v1039_v3, %v981_v5  ;;  %v1434_v5 = vld [vmem:[%s2960_s4] sm:$0x1f] }
 0x25d   : > { %v1120_v10 = vpop.f32.mrf.mxu1  ;;  %v1063_v16 = vadd.f32 %v1059_v4, %v1001_v14  ;;  %v2188_v4 = vld [vmem:[%s2960_s4 + $0x8] sm:$0x1f] }
 0x25f   : > { %v1100_v11 = vpop.f32.mrf.mxu0  ;;  %v1124_v20 = vadd.f32 %v1120_v10, %v1063_v16 }
 0x260   : > { %v1123_v17 = vadd.f32 %v1100_v11, %v1062_v15  ;;  %v2197_v15 = vld [vmem:[%s2960_s4 + $0x10] sm:$0x1f] }
 0x263   : > { %v1155_v12 = vpop.f32.mrf.mxu2 }
 0x264   : > { %v1175_v13 = vpop.f32.mrf.mxu3  ;;  %v1178_v26 = vadd.f32 %v1155_v12, %v1123_v17 }
 0x265   : > { %v1236_v23 = vpop.f32.mrf.mxu1  ;;  %v1179_v28 = vadd.f32 %v1175_v13, %v1124_v20 }
 0x267   : > { %v1216_v24 = vpop.f32.mrf.mxu0  ;;  %v1240_v33 = vadd.f32 %v1236_v23, %v1179_v28 }
 0x268   : > { %v1239_v34 = vadd.f32 %v1216_v24, %v1178_v26  ;;  %v2202_v24 = vld [vmem:[%s2960_s4 + $0x18] sm:$0x1f]  ;;  %v2207_v26 = vld [vmem:[%s2960_s4 + $0x20] sm:$0x1f] }
 0x26b   : > { %v1277_v21 = vpop.f32.mrf.mxu2 }
 0x26c   : > { %v1297_v22 = vpop.f32.mrf.mxu3  ;;  %v1300_v35 = vadd.f32 %v1277_v21, %v1239_v34 }
 0x26d   : > { %v1301_v36 = vadd.f32 %v1297_v22, %v1240_v33 }
 0x273   : > { %v1399_v37 = vpop.f32.mrf.mxu2 }
 0x274   : > { %v1419_v38 = vpop.f32.mrf.mxu3 }
 0x275   : > { %v1338_v39 = vpop.f32.mrf.mxu0  ;;  %v1358_v40 = vpop.f32.mrf.mxu1 }
 0x276   : > { %v1361_v47 = vadd.f32 %v1338_v39, %v1300_v35  ;;  %v1362_v48 = vadd.f32 %v1358_v40, %v1301_v36  ;;  %v2212_v35 = vld [vmem:[%s2960_s4 + $0x28] sm:$0x1f]  ;;  %v2217_v36 = vld [vmem:[%s2960_s4 + $0x30] sm:$0x1f] }
 0x278   : > { %v1422_v49 = vadd.f32 %v1399_v37, %v1361_v47  ;;  %v1423_v50 = vadd.f32 %v1419_v38, %v1362_v48 }
 0x27a   : > { %v1424_v51 = vmax.f32 %v1422_v49, 0.0  ;;  %v1425_v52 = vmax.f32 %v1423_v50, 0.0 }
 0x27c   : > { %1428 = vrot.lane.b32.xlu0 %v1425_v52, %s2359_s10  ;;  %1435 = vrot.lane.b32.xlu1 %v1424_v51, %s2360_s13  ;;  %v1665_v13 = vmul.f32 %v1424_v51, %v2457_v7  ;;  %v1666_v14 = vmul.f32 %v1425_v52, %v2455_v6 }
 0x27d   : > { %1426 = vrot.lane.b32.xlu2 %v1424_v51, %s2359_s10 }
 0x284   : > { %1543 = vrot.lane.b32.xlu0 %v1424_v51, %s2361_s14  ;;  %1545 = vrot.lane.b32.xlu1 %v1425_v52, %s2361_s14  ;;  %s216_s14 = sand.u32 1, %s2349_s19  }
 0x285   : > { %1437 = vrot.lane.b32.xlu2 %v1425_v52, %s2360_s13  ;;  %s2010_s11 = scalar_lea.sflag [#allocation3], %s216_s14 }
 0x28c   : > { %1606 = vrot.lane.b32.xlu0 %v1425_v52, %s2362_s15  ;;  %1720 = vrot.lane.b32.xlu1 %v1424_v51, %s2363_s16 }
 0x28d   : > { %1604 = vrot.lane.b32.xlu2 %v1424_v51, %s2362_s15  ;;  %s2089_s15 = sshll.u32 %s216_s14, 4 }
 0x294   : > { %1781 = vrot.lane.b32.xlu0 %v1424_v51, %s2364_s17  ;;  %1783 = vrot.lane.b32.xlu1 %v1425_v52, %s2364_s17 }
 0x295   : > { %1722 = vrot.lane.b32.xlu2 %v1425_v52, %s2363_s16  ;;  %s2239_s16 = sshll.u32 %s2418_s22, 4  ;;  %s218_s22 = scalar_lea.vmem [#allocation2], %s2089_s15 }
 0x296   : > { %s2023_s8 = sshll.u32 %s218_s22, 4  ;;  %s2024_s8 = int_to_ptr.vmem [resolvable:$true] %s2023_s8 }
 0x29c   : > { %1844 = vrot.lane.b32.xlu0 %v1425_v52, %s2365_s23  ;;  %1903 = vrot.lane.b32.xlu1 %v1424_v51, %s2366_s25 }
 0x29d   : > { %1842 = vrot.lane.b32.xlu2 %v1424_v51, %s2365_s23 }
 0x2a5   : > { %1905 = vrot.lane.b32.xlu2 %v1425_v52, %s2366_s25  ;;  %v2222_v52 = vld [vmem:[%s2960_s4 + $0x38] sm:$0x1f]  ;;  %s2021_s25 = scalar_lea.hbm %s2961_s5, %s2239_s16 }
 0x2a6   : > { %s2025_s9 = sshll.u32 %s2021_s25, 4  ;;  %s2026_s9 = int_to_ptr.hbm [resolvable:$true] %s2025_s9 }
 0x2a7   : > { %s2309_s12 = sshra.s32 %s2026_s9, 4  ;;  %s2310_s12 = int_to_ptr.hbm [resolvable:$true] %s2309_s12 }
 0x2a8   : > { %s2311_s26 = scalar_lea.hbm %s2310_s12, 16  ;;  %p2316_p0 = scmp.lt.s32.totalorder %s2310_s12, %s2961_s5 }
 0x2a9   : > { %p2312_p11 = scmp.ne.s32.totalorder %s2310_s12, %s2311_s26  ;;  %p2317_p1 = scmp.lt.s32.totalorder %s2315_s7, %s2311_s26 }
 0x2ab   : > { %p2313_p12 = pnand %p2312_p11, %p2435_p5  ;;  %p2318_p2 = por %p2317_p1, %p2316_p0 }
 0x2ad   : > { %p2314_p13 = pneg %p2313_p12 }
 0x2af   : > { %p2319_p3 = pnand %p2318_p2, %p2314_p13 }
 0x2d7   : > { %v1427_v53 = vpop.permute.xlu2 %1426 }
 0x2df   : > { %v1438_v54 = vpop.permute.xlu2 %1437 }
 0x2e7   : > { %v1605_v59 = vpop.permute.xlu2 %1604 }
 0x2ee   : > { %v1429_v55 = vpop.permute.xlu0 %1428  ;;  %v1436_v56 = vpop.permute.xlu1 %1435 }
 0x2ef   : > { %v1430_v60 = vsel %vm256_vm1, %v1427_v53, %v1429_v55  ;;  %v1431_v61 = vsel %vm256_vm1, %v1429_v55, %v1427_v53  ;;  %v1439_v62 = vsel %vm276_vm4, %v1436_v56, %v1438_v54  ;;  %v1440_v63 = vsel %vm276_vm4, %v1438_v54, %v1436_v56  ;;  %v1723_v12 = vpop.permute.xlu2 %1722 }
 0x2f0   : > { %v1432_v0 = vmul.f32 %v1431_v61, %v2486_v30  ;;  %v1433_v1 = vmul.f32 %v1430_v60, %v2488_v31  ;;  %v1441_v2 = vmul.f32 %v1440_v63, %v2511_v42  ;;  %v1442_v3 = vmul.f32 %v1439_v62, %v2513_v43 }
 0x2f2   : > { %2189 = vmatpush.msk.msrb.mxu0 %vm292_vm0, %v1441_v2  ;;  %2191 = vmatpush.msk.msrb.mxu1 %vm292_vm0, %v1442_v3 }
 0x2f3   : > { %2193 = vmatpush.msk.msrb.mxu2 %vm292_vm0, %v1432_v0  ;;  %2195 = vmatpush.msk.msrb.mxu3 %vm292_vm0, %v1433_v1 }
 0x2f4   : > { %2190 = vmatmul.msk.f32.vlgmr.msrb.gmra.mxu0 %vm288_vm2, %v2188_v4  ;;  %2192 = vmatmul.msk.f32.vlgmr.msrb.gmra.mxu1 %vm288_vm2, %v2188_v4 }
 0x2f5   : > { %2194 = vmatmul.msk.f32.vlgmr.msrb.gmra.mxu2 %vm288_vm2, %v1434_v5  ;;  %2196 = vmatmul.msk.f32.vlgmr.msrb.gmra.mxu3 %vm288_vm2, %v1434_v5 }
 0x2f6   : > { %v1544_v30 = vpop.permute.xlu0 %1543  ;;  %v1546_v31 = vpop.permute.xlu1 %1545 }
 0x2f7   : > { %v1547_v42 = vsel %vm397_vm3, %v1544_v30, %v1546_v31  ;;  %v1548_v43 = vsel %vm397_vm3, %v1546_v31, %v1544_v30  ;;  %v1843_v28 = vpop.permute.xlu2 %1842 }
 0x2f8   : > { %v1549_v10 = vmul.f32 %v1548_v43, %v2515_v44  ;;  %v1550_v11 = vmul.f32 %v1547_v42, %v2517_v45 }
 0x2fa   : > { %2198 = vmatpush.msk.msra.mxu0 %vm292_vm0, %v1549_v10  ;;  %2200 = vmatpush.msk.msra.mxu1 %vm292_vm0, %v1550_v11 }
 0x2fc   : > { %2208 = vmatpush.msk.msrb.mxu0 %vm292_vm0, %v1665_v13  ;;  %2210 = vmatpush.msk.msrb.mxu1 %vm292_vm0, %v1666_v14 }
 0x2fd   : > { %2199 = vmatmul.msk.f32.vlgmr.msra.gmra.mxu0 %vm288_vm2, %v2197_v15  ;;  %2201 = vmatmul.msk.f32.vlgmr.msra.gmra.mxu1 %vm288_vm2, %v2197_v15 }
 0x2fe   : > { %v1607_v44 = vpop.permute.xlu0 %1606  ;;  %v1721_v7 = vpop.permute.xlu1 %1720 }
 0x2ff   : > { %v1608_v6 = vsel %vm469_vm5, %v1605_v59, %v1607_v44  ;;  %v1609_v45 = vsel %vm469_vm5, %v1607_v44, %v1605_v59  ;;  %v1724_v16 = vsel %vm605_vm6, %v1721_v7, %v1723_v12  ;;  %v1725_v17 = vsel %vm605_vm6, %v1723_v12, %v1721_v7  ;;  %v1906_v37 = vpop.permute.xlu2 %1905 }
 0x300   : > { %v1610_v20 = vmul.f32 %v1609_v45, %v2542_v57  ;;  %v1611_v21 = vmul.f32 %v1608_v6, %v2544_v58  ;;  %v1726_v22 = vmul.f32 %v1724_v16, %v2578_v8  ;;  %v1727_v23 = vmul.f32 %v1725_v17, %v2580_v9 }
 0x302   : > { %2203 = vmatpush.msk.msra.mxu2 %vm292_vm0, %v1610_v20  ;;  %2205 = vmatpush.msk.msra.mxu3 %vm292_vm0, %v1611_v21 }
 0x303   : > { %2204 = vmatmul.msk.f32.vlgmr.msra.gmra.mxu2 %vm288_vm2, %v2202_v24  ;;  %2206 = vmatmul.msk.f32.vlgmr.msra.gmra.mxu3 %vm288_vm2, %v2202_v24 }
 0x304   : > { %2213 = vmatpush.msk.msrb.mxu2 %vm292_vm0, %v1726_v22  ;;  %2215 = vmatpush.msk.msrb.mxu3 %vm292_vm0, %v1727_v23 }
 0x305   : > { %2209 = vmatmul.msk.f32.vlgmr.msrb.gmra.mxu0 %vm288_vm2, %v2207_v26  ;;  %2211 = vmatmul.msk.f32.vlgmr.msrb.gmra.mxu1 %vm288_vm2, %v2207_v26 }
 0x306   : > { %v1782_v57 = vpop.permute.xlu0 %1781  ;;  %v1784_v58 = vpop.permute.xlu1 %1783 }
 0x307   : > { %v1785_v8 = vsel %vm677_vm7, %v1782_v57, %v1784_v58  ;;  %v1786_v9 = vsel %vm677_vm7, %v1784_v58, %v1782_v57 }
 0x308   : > { %v1787_v33 = vmul.f32 %v1785_v8, %v2600_v18  ;;  %v1788_v34 = vmul.f32 %v1786_v9, %v2602_v19  ;;  %v1965_v9 = vshrl.u32 %v254_v25, 7 }
 0x30a   : > { %2218 = vmatpush.msk.msra.mxu0 %vm292_vm0, %v1787_v33  ;;  %2220 = vmatpush.msk.msra.mxu1 %vm292_vm0, %v1788_v34  ;;  %vm1966_vm13 = vcmp.eq.s32.totalorder %v1965_v9, 4 }
 0x30b   : > { %2214 = vmatmul.msk.f32.vlgmr.msrb.gmra.mxu2 %vm288_vm2, %v2212_v35  ;;  %2216 = vmatmul.msk.f32.vlgmr.msrb.gmra.mxu3 %vm288_vm2, %v2212_v35 }
 0x30d   : > { %2219 = vmatmul.msk.f32.vlgmr.msra.gmra.mxu0 %vm288_vm2, %v2217_v36  ;;  %2221 = vmatmul.msk.f32.vlgmr.msra.gmra.mxu1 %vm288_vm2, %v2217_v36 }
 0x30e   : > { %v1845_v18 = vpop.permute.xlu0 %1844  ;;  %v1904_v19 = vpop.permute.xlu1 %1903 }
 0x30f   : > { %v1846_v38 = vsel %vm749_vm8, %v1843_v28, %v1845_v18  ;;  %v1847_v39 = vsel %vm749_vm8, %v1845_v18, %v1843_v28  ;;  %v1907_v40 = vsel %vm821_vm9, %v1904_v19, %v1906_v37  ;;  %v1908_v47 = vsel %vm821_vm9, %v1906_v37, %v1904_v19 }
 0x310   : > { %v1848_v48 = vmul.f32 %v1846_v38, %v2621_v29  ;;  %v1849_v49 = vmul.f32 %v1847_v39, %v2623_v32  ;;  %v1909_v50 = vmul.f32 %v1907_v40, %v2642_v41  ;;  %v1910_v51 = vmul.f32 %v1908_v47, %v2644_v46 }
 0x312   : > { %2223 = vmatpush.msk.msra.mxu2 %vm292_vm0, %v1848_v48  ;;  %2225 = vmatpush.msk.msra.mxu3 %vm292_vm0, %v1849_v49 }
 0x313   : > { %2228 = vmatpush.msk.msrb.mxu0 %vm292_vm0, %v1909_v50  ;;  %2230 = vmatpush.msk.msrb.mxu1 %vm292_vm0, %v1910_v51 }
 0x314   : > { %2224 = vmatmul.msk.f32.vlgmr.msra.gmra.mxu2 %vm288_vm2, %v2222_v52  ;;  %2226 = vmatmul.msk.f32.vlgmr.msra.gmra.mxu3 %vm288_vm2, %v2222_v52 }
 0x315   : > { %2229 = vmatmul.msk.f32.vlgmr.msrb.gmra.mxu0 %vm288_vm2, %v2227_v27  ;;  %2231 = vmatmul.msk.f32.vlgmr.msrb.gmra.mxu1 %vm288_vm2, %v2227_v27 }
 0x371   : > { %v1471_v29 = vpop.f32.mrf.mxu0  ;;  %v1491_v32 = vpop.f32.mrf.mxu1 }
 0x378   : > { %v1520_v53 = vpop.f32.mrf.mxu2  ;;  %v1540_v54 = vpop.f32.mrf.mxu3 }
 0x379   : > { %v1521_v59 = vadd.f32 %v1520_v53, %v1471_v29  ;;  %v1541_v60 = vadd.f32 %v1540_v54, %v1491_v32 }
 0x37a   : > { %v1579_v41 = vpop.f32.mrf.mxu0  ;;  %v1599_v46 = vpop.f32.mrf.mxu1 }
 0x37b   : > { %v1602_v63 = vadd.f32 %v1579_v41, %v1521_v59  ;;  %v1603_v0 = vadd.f32 %v1599_v46, %v1541_v60 }
 0x382   : > { %v1695_v55 = vpop.f32.mrf.mxu0  ;;  %v1715_v56 = vpop.f32.mrf.mxu1 }
 0x386   : > { %v1640_v61 = vpop.f32.mrf.mxu2  ;;  %v1660_v62 = vpop.f32.mrf.mxu3 }
 0x387   : > { %v1663_v1 = vadd.f32 %v1640_v61, %v1602_v63  ;;  %v1664_v2 = vadd.f32 %v1660_v62, %v1603_v0 }
 0x389   : > { %v1718_v31 = vadd.f32 %v1695_v55, %v1663_v1  ;;  %v1719_v42 = vadd.f32 %v1715_v56, %v1664_v2 }
 0x38a   : > { %v1817_v3 = vpop.f32.mrf.mxu0  ;;  %v1837_v4 = vpop.f32.mrf.mxu1 }
 0x38e   : > { %v1756_v5 = vpop.f32.mrf.mxu2  ;;  %v1776_v30 = vpop.f32.mrf.mxu3 }
 0x38f   : > { %v1779_v43 = vadd.f32 %v1756_v5, %v1718_v31  ;;  %v1780_v10 = vadd.f32 %v1776_v30, %v1719_v42 }
 0x391   : > { %v1840_v11 = vadd.f32 %v1817_v3, %v1779_v43  ;;  %v1841_v12 = vadd.f32 %v1837_v4, %v1780_v10 }
 0x392   : > { %v1939_v13 = vpop.f32.mrf.mxu0  ;;  %v1959_v14 = vpop.f32.mrf.mxu1 }
 0x397   : > { %v1878_v15 = vpop.f32.mrf.mxu2  ;;  %v1898_v44 = vpop.f32.mrf.mxu3 }
 0x398   : > { %v1901_v7 = vadd.f32 %v1878_v15, %v1840_v11  ;;  %v1902_v6 = vadd.f32 %v1898_v44, %v1841_v12 }
 0x39a   : > { %v1962_v45 = vadd.f32 %v1939_v13, %v1901_v7  ;;  %v1963_v16 = vadd.f32 %v1959_v14, %v1902_v6 }
 0x39c   : > { %v2232_v17 = vmul.f32 -1.442695, %v1962_v45  ;;  %v2233_v20 = vmul.f32 -1.442695, %v1963_v16 }
 0x39e   : > { %2287 = vpow2.f32 %v2232_v17 }
 0x39f   : > { %2289 = vpow2.f32 %v2233_v20 }
 0x3a4   : > { %v2288_v21 = vpop.eup %2287 }
 0x3a5   : > { %v2290_v22 = vpop.eup %2289  ;;  %v1973_v23 = vadd.f32 1.0, %v2288_v21 }
 0x3a6   : > { %v1974_v24 = vadd.f32 1.0, %v2290_v22 }
 0x3a7   : > { %2291 = vrcp.f32 %v1973_v23  ;;  %v1986_v33 = vand.u32 2147483648, %v1973_v23  ;;  %v1984_v36 = vand.u32 2147483647, %v1973_v23  ;;  %vm1980_vm12 = vweird.f32 %v1973_v23 }
 0x3a8   : > { %2293 = vrcp.f32 %v1974_v24  ;;  %v2001_v37 = vand.u32 2147483648, %v1974_v24  ;;  %v1999_v19 = vand.u32 2147483647, %v1974_v24  ;;  %vm1995_vm15 = vweird.f32 %v1974_v24 }
 0x3a9   : > { %v1987_v39 = vor.u32 1.1754944e-38, %v1986_v33  ;;  %vm1985_vm0 = vcmp.eq.f32.partialorder %v1984_v36, 8.507059e+37 }
 0x3aa   : > { %v2002_v47 = vor.u32 1.1754944e-38, %v2001_v37  ;;  %vm2000_vm2 = vcmp.eq.f32.partialorder %v1999_v19, 8.507059e+37 }
 0x3ad   : > { %v2292_v26 = vpop.eup %2291 }
 0x3ae   : > { %v2294_v28 = vpop.eup %2293  ;;  %v1976_v57 = vmul.f32 %v2292_v26, %v1973_v23  ;;  %vm1981_vm10 = vweird.f32 %v2292_v26 }
 0x3af   : > { %v1991_v58 = vmul.f32 %v2294_v28, %v1974_v24  ;;  %vm1996_vm11 = vweird.f32 %v2294_v28  ;;  %vm1982_vm14 = vmor %vm1980_vm12, %vm1981_vm10 }
 0x3b0   : > { %v1977_v8 = vsub.f32 1.0, %v1976_v57  ;;  %vm1997_vm1 = vmor %vm1995_vm15, %vm1996_vm11 }
 0x3b1   : > { %v1992_v34 = vsub.f32 1.0, %v1991_v58 }
 0x3b2   : > { %v1978_v35 = vmul.f32 %v2292_v26, %v1977_v8 }
 0x3b3   : > { %v1993_v18 = vmul.f32 %v2294_v28, %v1992_v34 }
 0x3b4   : > { %v1979_v38 = vadd.f32 %v2292_v26, %v1978_v35 }
 0x3b5   : > { %v1994_v40 = vadd.f32 %v2294_v28, %v1993_v18 }
 0x3b6   : > { %v1983_v25 = vsel %vm1982_vm14, %v2292_v26, %v1979_v38 }
 0x3b7   : > { %v1988_v48 = vsel %vm1985_vm0, %v1987_v39, %v1983_v25  ;;  %v1998_v49 = vsel %vm1997_vm1, %v2294_v28, %v1994_v40 }
 0x3b8   : > { %v2005_v50 = vsel %vm1966_vm13, %v1988_v48, %v1962_v45  ;;  %v2003_v51 = vsel %vm2000_vm2, %v2002_v47, %v1998_v49 }
 0x3b9   : > { %v2006_v52 = vsel %vm1966_vm13, %v2003_v51, %v1963_v16  ;;  %2007 = vst [vmem:[%s218_s22] sm:$0x1f] %v2005_v50 }
 0x3ba   : > { %2008 = vst [vmem:[%s218_s22 + $0x8] sm:$0x1f] %v2006_v52 }
 0x3bb   : > { %2322 = shalt.err (!%p2319_p3)
}
 0x3bc   : > { %2240 = dma.vmem_to_hbm [thread:$0]  (%p2435_p5), %s2024_s8, 256, %s2026_s9, %s2010_s11  }
 0x3bd PF: > { %p2246_p4 = scmp.ge.s32.totalorder %s2357_s21, 2  ;;  %s2037_s14 = sand.u32 1, %s2345_s18  }
 0x3be   : > { %s2038_s15 = scalar_lea.sflag [#allocation3], %s2037_s14 }
 0x3bf   : > { %p2243_p7 = pnand %p2246_p4, %p2439_p6 }
 0x3c1   : > { %p2244_p8 = pneg %p2243_p7 }
 0x3c3   : > { %2340 = dma.done.wait (%p2244_p8), %s2038_s15, 256  }
 0x3c4   : > { %2342 = vsyncadd (%p2244_p8), %s2038_s15, 4294967040  ;;  %p15_p9 = scmp.ge.s32.totalorder %s2422_s24, 4   ;;  %s2964_s18 = smov %s2349_s19 }
 0x3c5   : > { %s2965_s19 = smov %s2353_s20  ;;  %s2966_s20 = smov %s2433_s27 }
 0x3c6   : > { %s2967_s21 = smov %s2422_s24  ;;  %17 = sbr.rel (!%p15_p9) target bundleno = 3 (0x3), region = 107 }
 0x3cb   :  { %2044 = vsyncpa [#allocation3], 1 }
 0x3cc   :  { %2046 = vsyncpa [#allocation3 + $0x1], 1 }

</bundles_post_ra>
